<compile_context>
chip_gen: v5e
topology: v5e:2x2
jax: 0.10.0
libtpu: 0.0.40
codegen_flags: <defaults>
</compile_context>

<pallas_src>
import functools
import math

import jax
import jax.numpy as jnp
from jax.experimental import pallas as pl
from jax.experimental.pallas import tpu as pltpu

_LANES = 128
_CHUNK_ROWS = 64                        # 64 x 128 f32 = 8 vregs per live value
_TARGET_BLOCK_BYTES = 2 * 1024 * 1024   # ~2 MiB per input block
_SPLIT_BYTES = 512 * 1024               # force >=2 grid steps above this (v7x 2 TCs)
_VMEM_LIMIT_BYTES = 32 * 1024 * 1024


def _round_up(x, m):
    return ((x + m - 1) // m) * m


def _shr(x, k):
    """Logical right shift for int32 (arithmetic shift + mask) — portable."""
    return (x >> k) & ((1 << (32 - k)) - 1)


def _mix32(x):
    """lowbias32-style 32-bit integer hash (all ops wrap mod 2**32)."""
    x = x ^ _shr(x, 16)
    x = x * 2146120749            # 0x7FEB352D
    x = x ^ _shr(x, 15)
    x = x * (-2073319797)         # 0x846CA68B as signed int32
    x = x ^ _shr(x, 16)
    return x


def _norm_icdf(p):
    """Acklam's rational approximation of the inverse normal CDF (f32)."""
    a1, a2, a3 = -3.969683028665376e+01, 2.209460984245205e+02, -2.759285104469687e+02
    a4, a5, a6 = 1.383577518672690e+02, -3.066479806614716e+01, 2.506628277459239e+00
    b1, b2, b3 = -5.447609879822406e+01, 1.615858368580409e+02, -1.556989798598866e+02
    b4, b5 = 6.680131188771972e+01, -1.328068155288572e+01
    c1, c2, c3 = -7.784894002430293e-03, -3.223964580411365e-01, -2.400758277161838e+00
    c4, c5, c6 = -2.549732539343734e+00, 4.374664141464968e+00, 2.938163982698783e+00
    d1, d2, d3, d4 = 7.784695709041462e-03, 3.224671290700398e-01, 2.445134137142996e+00, 3.754408661907416e+00
    p_low = 0.02425

    # Central region |p - 0.5| <= 0.47575.
    q = p - 0.5
    r = q * q
    x_c = ((((((a1 * r + a2) * r + a3) * r + a4) * r + a5) * r + a6) * q
           / (((((b1 * r + b2) * r + b3) * r + b4) * r + b5) * r + 1.0))

    # Tails via symmetry z(p) = -z(1-p): evaluate the lower-tail formula once
    # (halves the transcendental count vs evaluating both tails).
    pt = jnp.minimum(p, 1.0 - p)
    qt = jnp.sqrt(-2.0 * jnp.log(pt))
    x_t = ((((((c1 * qt + c2) * qt + c3) * qt + c4) * qt + c5) * qt + c6)
           / ((((d1 * qt + d2) * qt + d3) * qt + d4) * qt + 1.0))
    x_t = jnp.where(p > 0.5, -x_t, x_t)

    return jnp.where(pt < p_low, x_t, x_c)


def _gaussian_noise_kernel(seed_ref, x_ref, o_ref, *, mean, sigma, chunk_rows):
    block_rows = x_ref.shape[0]
    # Per-call stream key: mix the seed so adjacent integer seeds decorrelate.
    key = _mix32(seed_ref[0] ^ (-1640531527))          # seed ^ 0x9E3779B9

    # Loop-invariant element-counter template (hoisted: broadcasts aren't CSE'd).
    row_iota = jax.lax.broadcasted_iota(jnp.int32, (chunk_rows, _LANES), 0)
    lane_iota = jax.lax.broadcasted_iota(jnp.int32, (chunk_rows, _LANES), 1)
    cnt0 = row_iota * _LANES + lane_iota

    base_row = pl.program_id(0) * block_rows
    inv24 = jnp.float32(1.0 / (1 << 24))
    mean_f = jnp.float32(mean)
    sigma_f = jnp.float32(sigma)

    def body(c, carry):
        r0 = pl.multiple_of(c * chunk_rows, chunk_rows)
        # Globally unique 32-bit counter per element -> hashed uniform bits.
        cnt = cnt0 + (base_row + r0) * _LANES
        bits = _mix32(cnt ^ key)
        # Top 24 bits -> uniform in (0, 1); clamp keeps the f32 logs finite.
        u = (_shr(bits, 8).astype(jnp.float32) + 0.5) * inv24
        u = jnp.clip(u, 1e-7, 1.0 - 1e-7)
        z = _norm_icdf(u)
        xs = x_ref[pl.ds(r0, chunk_rows), :].astype(jnp.float32)
        ys = xs + (z + mean_f) * sigma_f
        o_ref[pl.ds(r0, chunk_rows), :] = ys.astype(o_ref.dtype)
        return carry

    nchunks = block_rows // chunk_rows
    if nchunks == 1:
        body(0, 0)
    else:
        jax.lax.fori_loop(0, nchunks, body, 0, unroll=False)


def gaussian_noise(x, seed, *, mean=0.0, sigma=1.0, training=True):
    """Pallas TPU GaussianNoise forward: x + (N(0,1) + mean) * sigma when training."""
    # Static Python-level branch, mirroring PyTorch's `self.training` check.
    if (not training) or sigma <= 0.0:
        return x

    orig_shape, dtype = x.shape, x.dtype
    n = math.prod(orig_shape)
    if n == 0:
        return x
    itemsize = jnp.dtype(dtype).itemsize

    # Lane-dense (rows, 128) view. Fast path: no pad / no final slice when
    # n is already a lane multiple.
    rows = -(-n // _LANES)
    n_lane = rows * _LANES
    flat = x.reshape(-1)
    if n_lane != n:
        flat = jnp.pad(flat, (0, n_lane - n))
    x2d = flat.reshape(rows, _LANES)

    # Dtype-aware block size: ~2 MiB per block (8/16/32-row sublane packing is
    # automatically satisfied since _CHUNK_ROWS = 64). Mid/large inputs always
    # get >= 2 grid steps so both v7x TensorCores have work; the final block
    # may be partial (Pallas masks its out-of-bounds rows).
    target_rows = max(_CHUNK_ROWS, _TARGET_BLOCK_BYTES // (_LANES * itemsize))
    steps = -(-rows // target_rows)
    if steps == 1 and rows * _LANES * itemsize > _SPLIT_BYTES:
        steps = 2
    block_rows = _round_up(-(-rows // steps), _CHUNK_ROWS)
    grid = -(-rows // block_rows)

    seed_arr = jnp.atleast_1d(jnp.asarray(seed, dtype=jnp.int32))
    kernel = functools.partial(
        _gaussian_noise_kernel, mean=float(mean), sigma=float(sigma),
        chunk_rows=_CHUNK_ROWS)

    cost = pl.CostEstimate(
        flops=int(60 * n),
        transcendentals=int(2 * n),
        bytes_accessed=int(2 * n * itemsize))

    out2d = pl.pallas_call(
        kernel,
        out_shape=jax.ShapeDtypeStruct((rows, _LANES), dtype),
        grid_spec=pltpu.PrefetchScalarGridSpec(
            num_scalar_prefetch=1,
            grid=(grid,),
            in_specs=[pl.BlockSpec((block_rows, _LANES), lambda i, seed_ref: (i, 0))],
            out_specs=pl.BlockSpec((block_rows, _LANES), lambda i, seed_ref: (i, 0)),
        ),
        compiler_params=pltpu.CompilerParams(
            dimension_semantics=("parallel",),          # independent blocks
            vmem_limit_bytes=_VMEM_LIMIT_BYTES,
        ),
        cost_estimate=cost,
    )(seed_arr, x2d)

    if n_lane != n:
        return out2d.reshape(-1)[:n].reshape(orig_shape)
    return out2d.reshape(orig_shape)


if __name__ == "__main__":
    key = jax.random.PRNGKey(0)
    x = jax.random.normal(key, (2, 4, 16, 16), jnp.float32)   # batch=2, ch=4, 16x16
    mean, sigma, seed = 0.5, 0.25, 1234

    y = jax.block_until_ready(
        gaussian_noise(x, seed, mean=mean, sigma=sigma, training=True))
    assert y.shape == x.shape and y.dtype == x.dtype

    # Distributional check: recovered noise (y - x)/sigma - mean should be ~N(0,1).
    z = (y - x) / sigma - mean
    zm, zs = float(jnp.mean(z)), float(jnp.std(z))
    assert abs(zm) < 0.15, f"noise mean off: {zm}"
    assert abs(zs - 1.0) < 0.15, f"noise std off: {zs}"

    # Determinism: same seed -> identical output; different seed -> different noise.
    y2 = jax.block_until_ready(
        gaussian_noise(x, seed, mean=mean, sigma=sigma, training=True))
    assert jnp.array_equal(y, y2)
    y3 = jax.block_until_ready(
        gaussian_noise(x, seed + 1, mean=mean, sigma=sigma, training=True))
    assert not jnp.array_equal(y, y3)

    # Eval mode / sigma <= 0 path is the identity (PyTorch else-branch).
    assert jnp.array_equal(gaussian_noise(x, seed, training=False), x)
    assert jnp.array_equal(gaussian_noise(x, seed, sigma=0.0, training=True), x)

    print("KERNEL_OK")
</pallas_src>

<mosaic_0001>
module attributes {stable_mosaic.version = 11 : i64} {
  func.func @_gaussian_noise_kernel(%arg0: i32, %arg1: memref<1xi32, #tpu.memory_space<smem>>, %arg2: memref<64x128xf32, #tpu.memory_space<vmem>>, %arg3: memref<64x128xf32, #tpu.memory_space<vmem>>) attributes {dimension_semantics = [#tpu.dimension_semantics<parallel>], iteration_bounds = array<i64: 1>, scalar_prefetch = 1 : i64, scratch_operands = 0 : i64, tpu.core_type = #tpu.core_type<tc>, window_params = [{transform_indices = @transform_0, window_bounds = array<i64: 64, 128>}, {transform_indices = @transform_1, window_bounds = array<i64: 64, 128>}]} {
    %c0 = arith.constant 0 : index
    %0 = memref.load %arg1[%c0] : memref<1xi32, #tpu.memory_space<smem>>
    %c-1640531527_i32 = arith.constant -1640531527 : i32
    %1 = arith.xori %0, %c-1640531527_i32 : i32
    %c16_i32 = arith.constant 16 : i32
    %2 = arith.shrsi %1, %c16_i32 : i32
    %c65535_i32 = arith.constant 65535 : i32
    %3 = arith.andi %2, %c65535_i32 : i32
    %4 = arith.xori %1, %3 : i32
    %c2146120749_i32 = arith.constant 2146120749 : i32
    %5 = arith.muli %4, %c2146120749_i32 : i32
    %c15_i32 = arith.constant 15 : i32
    %6 = arith.shrsi %5, %c15_i32 : i32
    %c131071_i32 = arith.constant 131071 : i32
    %7 = arith.andi %6, %c131071_i32 : i32
    %8 = arith.xori %5, %7 : i32
    %c-2073319797_i32 = arith.constant -2073319797 : i32
    %9 = arith.muli %8, %c-2073319797_i32 : i32
    %c16_i32_0 = arith.constant 16 : i32
    %10 = arith.shrsi %9, %c16_i32_0 : i32
    %c65535_i32_1 = arith.constant 65535 : i32
    %11 = arith.andi %10, %c65535_i32_1 : i32
    %12 = arith.xori %9, %11 : i32
    %13 = tpu.iota {dimensions = array<i32: 0>} : vector<64x128xi32>
    %14 = tpu.iota {dimensions = array<i32: 1>} : vector<64x128xi32>
    %c128_i32 = arith.constant 128 : i32
    %15 = vector.broadcast %c128_i32 : i32 to vector<64x128xi32>
    %16 = arith.muli %13, %15 : vector<64x128xi32>
    %17 = arith.addi %16, %14 : vector<64x128xi32>
    %c64_i32 = arith.constant 64 : i32
    %18 = arith.muli %arg0, %c64_i32 : i32
    %c0_i32 = arith.constant 0 : i32
    %19 = tpu.assume_multiple %c0_i32, 64 : i32
    %20 = arith.addi %18, %19 : i32
    %c128_i32_2 = arith.constant 128 : i32
    %21 = arith.muli %20, %c128_i32_2 : i32
    %22 = vector.broadcast %21 : i32 to vector<64x128xi32>
    %23 = arith.addi %17, %22 : vector<64x128xi32>
    %24 = vector.broadcast %12 : i32 to vector<64x128xi32>
    %25 = arith.xori %23, %24 : vector<64x128xi32>
    %c16_i32_3 = arith.constant 16 : i32
    %26 = vector.broadcast %c16_i32_3 : i32 to vector<64x128xi32>
    %27 = arith.shrsi %25, %26 : vector<64x128xi32>
    %c65535_i32_4 = arith.constant 65535 : i32
    %28 = vector.broadcast %c65535_i32_4 : i32 to vector<64x128xi32>
    %29 = arith.andi %27, %28 : vector<64x128xi32>
    %30 = arith.xori %25, %29 : vector<64x128xi32>
    %c2146120749_i32_5 = arith.constant 2146120749 : i32
    %31 = vector.broadcast %c2146120749_i32_5 : i32 to vector<64x128xi32>
    %32 = arith.muli %30, %31 : vector<64x128xi32>
    %c15_i32_6 = arith.constant 15 : i32
    %33 = vector.broadcast %c15_i32_6 : i32 to vector<64x128xi32>
    %34 = arith.shrsi %32, %33 : vector<64x128xi32>
    %c131071_i32_7 = arith.constant 131071 : i32
    %35 = vector.broadcast %c131071_i32_7 : i32 to vector<64x128xi32>
    %36 = arith.andi %34, %35 : vector<64x128xi32>
    %37 = arith.xori %32, %36 : vector<64x128xi32>
    %c-2073319797_i32_8 = arith.constant -2073319797 : i32
    %38 = vector.broadcast %c-2073319797_i32_8 : i32 to vector<64x128xi32>
    %39 = arith.muli %37, %38 : vector<64x128xi32>
    %c16_i32_9 = arith.constant 16 : i32
    %40 = vector.broadcast %c16_i32_9 : i32 to vector<64x128xi32>
    %41 = arith.shrsi %39, %40 : vector<64x128xi32>
    %c65535_i32_10 = arith.constant 65535 : i32
    %42 = vector.broadcast %c65535_i32_10 : i32 to vector<64x128xi32>
    %43 = arith.andi %41, %42 : vector<64x128xi32>
    %44 = arith.xori %39, %43 : vector<64x128xi32>
    %c8_i32 = arith.constant 8 : i32
    %45 = vector.broadcast %c8_i32 : i32 to vector<64x128xi32>
    %46 = arith.shrsi %44, %45 : vector<64x128xi32>
    %c16777215_i32 = arith.constant 16777215 : i32
    %47 = vector.broadcast %c16777215_i32 : i32 to vector<64x128xi32>
    %48 = arith.andi %46, %47 : vector<64x128xi32>
    %49 = arith.sitofp %48 : vector<64x128xi32> to vector<64x128xf32>
    %cst = arith.constant 5.000000e-01 : f32
    %50 = vector.broadcast %cst : f32 to vector<64x128xf32>
    %51 = arith.addf %49, %50 : vector<64x128xf32>
    %cst_11 = arith.constant 5.96046448E-8 : f32
    %52 = vector.broadcast %cst_11 : f32 to vector<64x128xf32>
    %53 = arith.mulf %51, %52 : vector<64x128xf32>
    %cst_12 = arith.constant 1.000000e-07 : f32
    %cst_13 = arith.constant 0.99999988 : f32
    %54 = vector.broadcast %cst_12 : f32 to vector<64x128xf32>
    %55 = arith.maximumf %54, %53 : vector<64x128xf32>
    %56 = vector.broadcast %cst_13 : f32 to vector<64x128xf32>
    %57 = arith.minimumf %56, %55 : vector<64x128xf32>
    %cst_14 = arith.constant 5.000000e-01 : f32
    %58 = vector.broadcast %cst_14 : f32 to vector<64x128xf32>
    %59 = arith.subf %57, %58 : vector<64x128xf32>
    %60 = arith.mulf %59, %59 : vector<64x128xf32>
    %cst_15 = arith.constant -39.6968307 : f32
    %61 = vector.broadcast %cst_15 : f32 to vector<64x128xf32>
    %62 = arith.mulf %61, %60 : vector<64x128xf32>
    %cst_16 = arith.constant 220.946106 : f32
    %63 = vector.broadcast %cst_16 : f32 to vector<64x128xf32>
    %64 = arith.addf %62, %63 : vector<64x128xf32>
    %65 = arith.mulf %64, %60 : vector<64x128xf32>
    %cst_17 = arith.constant -275.928497 : f32
    %66 = vector.broadcast %cst_17 : f32 to vector<64x128xf32>
    %67 = arith.addf %65, %66 : vector<64x128xf32>
    %68 = arith.mulf %67, %60 : vector<64x128xf32>
    %cst_18 = arith.constant 138.357758 : f32
    %69 = vector.broadcast %cst_18 : f32 to vector<64x128xf32>
    %70 = arith.addf %68, %69 : vector<64x128xf32>
    %71 = arith.mulf %70, %60 : vector<64x128xf32>
    %cst_19 = arith.constant -30.6647987 : f32
    %72 = vector.broadcast %cst_19 : f32 to vector<64x128xf32>
    %73 = arith.addf %71, %72 : vector<64x128xf32>
    %74 = arith.mulf %73, %60 : vector<64x128xf32>
    %cst_20 = arith.constant 2.50662827 : f32
    %75 = vector.broadcast %cst_20 : f32 to vector<64x128xf32>
    %76 = arith.addf %74, %75 : vector<64x128xf32>
    %77 = arith.mulf %76, %59 : vector<64x128xf32>
    %cst_21 = arith.constant -54.4760971 : f32
    %78 = vector.broadcast %cst_21 : f32 to vector<64x128xf32>
    %79 = arith.mulf %78, %60 : vector<64x128xf32>
    %cst_22 = arith.constant 161.585831 : f32
    %80 = vector.broadcast %cst_22 : f32 to vector<64x128xf32>
    %81 = arith.addf %79, %80 : vector<64x128xf32>
    %82 = arith.mulf %81, %60 : vector<64x128xf32>
    %cst_23 = arith.constant -155.698975 : f32
    %83 = vector.broadcast %cst_23 : f32 to vector<64x128xf32>
    %84 = arith.addf %82, %83 : vector<64x128xf32>
    %85 = arith.mulf %84, %60 : vector<64x128xf32>
    %cst_24 = arith.constant 66.8013153 : f32
    %86 = vector.broadcast %cst_24 : f32 to vector<64x128xf32>
    %87 = arith.addf %85, %86 : vector<64x128xf32>
    %88 = arith.mulf %87, %60 : vector<64x128xf32>
    %cst_25 = arith.constant -13.2806816 : f32
    %89 = vector.broadcast %cst_25 : f32 to vector<64x128xf32>
    %90 = arith.addf %88, %89 : vector<64x128xf32>
    %91 = arith.mulf %90, %60 : vector<64x128xf32>
    %cst_26 = arith.constant 1.000000e+00 : f32
    %92 = vector.broadcast %cst_26 : f32 to vector<64x128xf32>
    %93 = arith.addf %91, %92 : vector<64x128xf32>
    %94 = arith.divf %77, %93 : vector<64x128xf32>
    %cst_27 = arith.constant 1.000000e+00 : f32
    %95 = vector.broadcast %cst_27 : f32 to vector<64x128xf32>
    %96 = arith.subf %95, %57 : vector<64x128xf32>
    %97 = arith.minimumf %57, %96 : vector<64x128xf32>
    %98 = math.log %97 : vector<64x128xf32>
    %cst_28 = arith.constant -2.000000e+00 : f32
    %99 = vector.broadcast %cst_28 : f32 to vector<64x128xf32>
    %100 = arith.mulf %99, %98 : vector<64x128xf32>
    %101 = math.sqrt %100 : vector<64x128xf32>
    %cst_29 = arith.constant -0.0077848942 : f32
    %102 = vector.broadcast %cst_29 : f32 to vector<64x128xf32>
    %103 = arith.mulf %102, %101 : vector<64x128xf32>
    %cst_30 = arith.constant -0.322396457 : f32
    %104 = vector.broadcast %cst_30 : f32 to vector<64x128xf32>
    %105 = arith.addf %103, %104 : vector<64x128xf32>
    %106 = arith.mulf %105, %101 : vector<64x128xf32>
    %cst_31 = arith.constant -2.40075827 : f32
    %107 = vector.broadcast %cst_31 : f32 to vector<64x128xf32>
    %108 = arith.addf %106, %107 : vector<64x128xf32>
    %109 = arith.mulf %108, %101 : vector<64x128xf32>
    %cst_32 = arith.constant -2.54973245 : f32
    %110 = vector.broadcast %cst_32 : f32 to vector<64x128xf32>
    %111 = arith.addf %109, %110 : vector<64x128xf32>
    %112 = arith.mulf %111, %101 : vector<64x128xf32>
    %cst_33 = arith.constant 4.37466431 : f32
    %113 = vector.broadcast %cst_33 : f32 to vector<64x128xf32>
    %114 = arith.addf %112, %113 : vector<64x128xf32>
    %115 = arith.mulf %114, %101 : vector<64x128xf32>
    %cst_34 = arith.constant 2.938164 : f32
    %116 = vector.broadcast %cst_34 : f32 to vector<64x128xf32>
    %117 = arith.addf %115, %116 : vector<64x128xf32>
    %cst_35 = arith.constant 0.00778469583 : f32
    %118 = vector.broadcast %cst_35 : f32 to vector<64x128xf32>
    %119 = arith.mulf %118, %101 : vector<64x128xf32>
    %cst_36 = arith.constant 0.322467119 : f32
    %120 = vector.broadcast %cst_36 : f32 to vector<64x128xf32>
    %121 = arith.addf %119, %120 : vector<64x128xf32>
    %122 = arith.mulf %121, %101 : vector<64x128xf32>
    %cst_37 = arith.constant 2.44513416 : f32
    %123 = vector.broadcast %cst_37 : f32 to vector<64x128xf32>
    %124 = arith.addf %122, %123 : vector<64x128xf32>
    %125 = arith.mulf %124, %101 : vector<64x128xf32>
    %cst_38 = arith.constant 3.7544086 : f32
    %126 = vector.broadcast %cst_38 : f32 to vector<64x128xf32>
    %127 = arith.addf %125, %126 : vector<64x128xf32>
    %128 = arith.mulf %127, %101 : vector<64x128xf32>
    %cst_39 = arith.constant 1.000000e+00 : f32
    %129 = vector.broadcast %cst_39 : f32 to vector<64x128xf32>
    %130 = arith.addf %128, %129 : vector<64x128xf32>
    %131 = arith.divf %117, %130 : vector<64x128xf32>
    %cst_40 = arith.constant 5.000000e-01 : f32
    %132 = vector.broadcast %cst_40 : f32 to vector<64x128xf32>
    %133 = arith.cmpf ogt, %57, %132 : vector<64x128xf32>
    %cst_41 = arith.constant 0.000000e+00 : f32
    %134 = vector.broadcast %cst_41 : f32 to vector<64x128xf32>
    %135 = arith.subf %134, %131 : vector<64x128xf32>
    %136 = arith.select %133, %135, %131 : vector<64x128xi1>, vector<64x128xf32>
    %cst_42 = arith.constant 2.425000e-02 : f32
    %137 = vector.broadcast %cst_42 : f32 to vector<64x128xf32>
    %138 = arith.cmpf olt, %97, %137 : vector<64x128xf32>
    %139 = arith.select %138, %136, %94 : vector<64x128xi1>, vector<64x128xf32>
    %140 = arith.index_cast %19 : i32 to index
    %c0_43 = arith.constant 0 : index
    %141 = vector.load %arg2[%140, %c0_43] : memref<64x128xf32, #tpu.memory_space<vmem>>, vector<64x128xf32>
    %cst_44 = arith.constant 5.000000e-01 : f32
    %142 = vector.broadcast %cst_44 : f32 to vector<64x128xf32>
    %143 = arith.addf %139, %142 : vector<64x128xf32>
    %cst_45 = arith.constant 2.500000e-01 : f32
    %144 = vector.broadcast %cst_45 : f32 to vector<64x128xf32>
    %145 = arith.mulf %143, %144 : vector<64x128xf32>
    %146 = arith.addf %141, %145 : vector<64x128xf32>
    %147 = arith.index_cast %19 : i32 to index
    %c0_46 = arith.constant 0 : index
    %148 = vector.load %arg3[%147, %c0_46] : memref<64x128xf32, #tpu.memory_space<vmem>>, vector<64x128xf32>
    tpu.vector_store %arg3[%147, %c0_46], %146 {strides = array<i32>} : memref<64x128xf32, #tpu.memory_space<vmem>>, vector<64x128xf32>,
    return
  }
  func.func @transform_0(%arg0: i32, %arg1: memref<1xi32, #tpu.memory_space<smem>>) -> (i32, i32) {
    %c0_i32 = arith.constant 0 : i32
    %c0_i32_0 = arith.constant 0 : i32
    return %arg0, %c0_i32 : i32, i32
  }
  func.func @transform_1(%arg0: i32, %arg1: memref<1xi32, #tpu.memory_space<smem>>) -> (i32, i32) {
    %c0_i32 = arith.constant 0 : i32
    %c0_i32_0 = arith.constant 0 : i32
    return %arg0, %c0_i32 : i32, i32
  }
}

</mosaic_0001>

<bundles_post_ra>
// kernel: tpu_custom_call.1
= control target key start
LH: loop header
LB: loop body
LE: loop exit
PB: predicated region body
PF: predicated region fallthrough
CT: control target
= control target key end

     0   :  { %8 = vsyncpa [#allocation5], 0  ;;  %s2210_s0 = inlined_call_operand.<no memory space> [shape: s32[1], index: 0, kind: input, shape index: {}]   ;;  %s2211_s1 = inlined_call_operand.hbm [shape: f32[16,128], index: 1, kind: input, shape index: {}]   ;;  %s2212_s2 = inlined_call_operand.hbm [shape: f32[16,128], index: 2, kind: output, shape index: {}]  }
   0x1   :  { %9 = vsyncpa [#allocation6], 0 }
   0x2   :  { %13 = vsyncadd [#allocation5], 768  ;;  %s14_s11 = sshll.u32 %s2211_s1, 4  ;;  %s1195_s12 = smov [#allocation4]   ;;  %s15_s11 = int_to_ptr.hbm [resolvable:$true] %s14_s11 }
   0x3   :  { %s16_s13 = sshll.u32 %s1195_s12, 4  ;;  %s1196_s14 = smov 128   ;;  %s17_s13 = int_to_ptr.vmem [resolvable:$true] %s16_s13 }
   0x4   :  { %s1197_s15 = smov 8  }
   0x5   :  { %22 = dma.hbm_to_vmem [thread:$0]  %s15_s11, 256, %s17_s13, [#allocation5], %s1196_s14, %s1196_s14, %s1197_s15  }
   0x6   :  { %1191 = dma.done.wait [#allocation5], 1024  }
   0x7   :  { %1192 = vsyncadd [#allocation5], 4294966272  ;;  %s28_s18 = sxor.u32 2654435769, %s2210_s0  ;;  %v40_v0 = vlaneseq }
   0x8   :  { %s29_s19 = sshra.s32 %s28_s18, 16 }
   0x9   :  { %s30_s20 = sand.u32 65535, %s29_s19  ;;  %v41_v1 = vshrl.u32 %v40_v0, 7  ;;  %v50_v9 = vand.u32 127, %v40_v0 }
   0xa   :  { %s31_s1 = sxor.u32 %s30_s20, %s28_s18 }
   0xb   :  { %s32_s21 = smul.u32 2146120749, %s31_s1  ;;  %v42_v2 = vadd.s32 8, %v41_v1  ;;  %v43_v3 = vadd.s32 16, %v41_v1  ;;  %v44_v4 = vadd.s32 24, %v41_v1  ;;  %v45_v5 = vadd.s32 32, %v41_v1 }
   0xc   :  { %v46_v6 = vadd.s32 40, %v41_v1  ;;  %v47_v7 = vadd.s32 48, %v41_v1  ;;  %v48_v8 = vadd.s32 56, %v41_v1  ;;  %v51_v10 = vmul.u32 128, %v41_v1 }
   0xd   :  { %s33_s22 = sshra.s32 %s32_s21, 15  ;;  %v52_v11 = vmul.u32 128, %v42_v2  ;;  %v53_v12 = vmul.u32 128, %v43_v3  ;;  %v54_v13 = vmul.u32 128, %v44_v4  ;;  %v55_v14 = vmul.u32 128, %v45_v5 }
   0xe   :  { %s34_s23 = sand.u32 131071, %s33_s22  ;;  %v56_v15 = vmul.u32 128, %v46_v6  ;;  %v57_v16 = vmul.u32 128, %v47_v7  ;;  %v58_v17 = vmul.u32 128, %v48_v8  ;;  %v59_v18 = vadd.s32 %v51_v10, %v50_v9 }
   0xf   :  { %s35_s0 = sxor.u32 %s34_s23, %s32_s21  ;;  %v60_v19 = vadd.s32 %v52_v11, %v50_v9  ;;  %v61_v20 = vadd.s32 %v53_v12, %v50_v9  ;;  %v62_v21 = vadd.s32 %v54_v13, %v50_v9  ;;  %v63_v22 = vadd.s32 %v55_v14, %v50_v9 }
  0x10   :  { %s36_s24 = smul.u32 2221647499, %s35_s0  ;;  %v64_v23 = vadd.s32 %v56_v15, %v50_v9  ;;  %v65_v24 = vadd.s32 %v57_v16, %v50_v9  ;;  %v66_v25 = vadd.s32 %v58_v17, %v50_v9 }
  0x12   :  { %s37_s25 = sshra.s32 %s36_s24, 16 }
  0x13   :  { %s38_s26 = sand.u32 65535, %s37_s25 }
  0x14   :  { %s39_s27 = sxor.u32 %s38_s26, %s36_s24 }
  0x15   :  { %v79_v26 = vstv %s39_s27 }
  0x16   :  { %v80_v27 = vxor.u32 %v79_v26, %v59_v18  ;;  %v81_v28 = vxor.u32 %v79_v26, %v60_v19  ;;  %v82_v29 = vxor.u32 %v79_v26, %v61_v20  ;;  %v83_v30 = vxor.u32 %v79_v26, %v62_v21 }
  0x17   :  { %v84_v31 = vxor.u32 %v79_v26, %v63_v22  ;;  %v85_v32 = vxor.u32 %v79_v26, %v64_v23  ;;  %v86_v33 = vxor.u32 %v79_v26, %v65_v24  ;;  %v87_v34 = vxor.u32 %v79_v26, %v66_v25 }
  0x18   :  { %v1035_v35 = vshrl.u32 %v80_v27, 16  ;;  %v1036_v36 = vshrl.u32 %v81_v28, 16  ;;  %v1037_v37 = vshrl.u32 %v82_v29, 16  ;;  %v1038_v38 = vshrl.u32 %v83_v30, 16 }
  0x19   :  { %v1039_v39 = vshrl.u32 %v84_v31, 16  ;;  %v1040_v40 = vshrl.u32 %v85_v32, 16  ;;  %v1041_v41 = vshrl.u32 %v86_v33, 16  ;;  %v1042_v42 = vshrl.u32 %v87_v34, 16 }
  0x1a   :  { %v104_v43 = vxor.u32 %v1035_v35, %v80_v27  ;;  %v105_v44 = vxor.u32 %v1036_v36, %v81_v28  ;;  %v106_v45 = vxor.u32 %v1037_v37, %v82_v29  ;;  %v107_v46 = vxor.u32 %v1038_v38, %v83_v30 }
  0x1b   :  { %v108_v47 = vxor.u32 %v1039_v39, %v84_v31  ;;  %v109_v48 = vxor.u32 %v1040_v40, %v85_v32  ;;  %v110_v49 = vxor.u32 %v1041_v41, %v86_v33  ;;  %v111_v50 = vxor.u32 %v1042_v42, %v87_v34 }
  0x1c   :  { %v112_v51 = vmul.u32 2146120749, %v104_v43  ;;  %v113_v52 = vmul.u32 2146120749, %v105_v44  ;;  %v114_v53 = vmul.u32 2146120749, %v106_v45 }
  0x1d   :  { %v115_v54 = vmul.u32 2146120749, %v107_v46  ;;  %v116_v55 = vmul.u32 2146120749, %v108_v47  ;;  %v117_v56 = vmul.u32 2146120749, %v109_v48 }
  0x1e   :  { %v118_v57 = vmul.u32 2146120749, %v110_v49  ;;  %v119_v58 = vmul.u32 2146120749, %v111_v50  ;;  %v1043_v59 = vshrl.u32 %v112_v51, 15  ;;  %v1044_v60 = vshrl.u32 %v113_v52, 15 }
  0x1f   :  { %v1045_v61 = vshrl.u32 %v114_v53, 15  ;;  %v1046_v62 = vshrl.u32 %v115_v54, 15  ;;  %v1047_v63 = vshrl.u32 %v116_v55, 15  ;;  %v1048_v0 = vshrl.u32 %v117_v56, 15 }
  0x20   :  { %v1049_v1 = vshrl.u32 %v118_v57, 15  ;;  %v1050_v2 = vshrl.u32 %v119_v58, 15  ;;  %v136_v3 = vxor.u32 %v1043_v59, %v112_v51  ;;  %v137_v4 = vxor.u32 %v1044_v60, %v113_v52 }
  0x21   :  { %v138_v5 = vxor.u32 %v1045_v61, %v114_v53  ;;  %v139_v6 = vxor.u32 %v1046_v62, %v115_v54  ;;  %v140_v7 = vxor.u32 %v1047_v63, %v116_v55  ;;  %v141_v8 = vxor.u32 %v1048_v0, %v117_v56 }
  0x22   :  { %v142_v9 = vxor.u32 %v1049_v1, %v118_v57  ;;  %v143_v10 = vxor.u32 %v1050_v2, %v119_v58  ;;  %v144_v11 = vmul.u32 2221647499, %v136_v3  ;;  %v145_v12 = vmul.u32 2221647499, %v137_v4 }
  0x23   :  { %v146_v13 = vmul.u32 2221647499, %v138_v5  ;;  %v147_v14 = vmul.u32 2221647499, %v139_v6  ;;  %v148_v15 = vmul.u32 2221647499, %v140_v7 }
  0x24   :  { %v149_v16 = vmul.u32 2221647499, %v141_v8  ;;  %v150_v17 = vmul.u32 2221647499, %v142_v9  ;;  %v151_v18 = vmul.u32 2221647499, %v143_v10 }
  0x25   :  { %v1051_v19 = vshrl.u32 %v144_v11, 16  ;;  %v1052_v20 = vshrl.u32 %v145_v12, 16  ;;  %v1053_v21 = vshrl.u32 %v146_v13, 16  ;;  %v1054_v22 = vshrl.u32 %v147_v14, 16 }
  0x26   :  { %v1055_v23 = vshrl.u32 %v148_v15, 16  ;;  %v1056_v24 = vshrl.u32 %v149_v16, 16  ;;  %v1057_v25 = vshrl.u32 %v150_v17, 16  ;;  %v1058_v26 = vshrl.u32 %v151_v18, 16 }
  0x27   :  { %v168_v27 = vxor.u32 %v1051_v19, %v144_v11  ;;  %v169_v28 = vxor.u32 %v1052_v20, %v145_v12  ;;  %v170_v29 = vxor.u32 %v1053_v21, %v146_v13  ;;  %v171_v30 = vxor.u32 %v1054_v22, %v147_v14 }
  0x28   :  { %v172_v31 = vxor.u32 %v1055_v23, %v148_v15  ;;  %v173_v33 = vxor.u32 %v1056_v24, %v149_v16  ;;  %v174_v35 = vxor.u32 %v1057_v25, %v150_v17  ;;  %v175_v36 = vxor.u32 %v1058_v26, %v151_v18 }
  0x29   :  { %v1059_v32 = vshrl.u32 %v168_v27, 8  ;;  %v1060_v34 = vshrl.u32 %v169_v28, 8  ;;  %v1061_v37 = vshrl.u32 %v170_v29, 8  ;;  %v1062_v38 = vshrl.u32 %v171_v30, 8 }
  0x2a   :  { %v1063_v40 = vshrl.u32 %v172_v31, 8  ;;  %v1064_v41 = vshrl.u32 %v173_v33, 8  ;;  %v1065_v43 = vshrl.u32 %v174_v35, 8  ;;  %v1066_v44 = vshrl.u32 %v175_v36, 8 }
  0x2b   :  { %v192_v39 = vcvt.s32.f32 %v1059_v32  ;;  %v193_v42 = vcvt.s32.f32 %v1060_v34  ;;  %v194_v45 = vcvt.s32.f32 %v1061_v37  ;;  %v195_v46 = vcvt.s32.f32 %v1062_v38 }
  0x2c   :  { %v196_v48 = vcvt.s32.f32 %v1063_v40  ;;  %v197_v49 = vcvt.s32.f32 %v1064_v41  ;;  %v198_v51 = vcvt.s32.f32 %v1065_v43  ;;  %v199_v52 = vcvt.s32.f32 %v1066_v44 }
  0x2d   :  { %v200_v47 = vadd.f32 0.5, %v192_v39  ;;  %v201_v50 = vadd.f32 0.5, %v193_v42  ;;  %v202_v53 = vadd.f32 0.5, %v194_v45  ;;  %v203_v54 = vadd.f32 0.5, %v195_v46 }
  0x2e   :  { %v204_v56 = vadd.f32 0.5, %v196_v48  ;;  %v205_v57 = vadd.f32 0.5, %v197_v49  ;;  %v206_v59 = vadd.f32 0.5, %v198_v51  ;;  %v207_v60 = vadd.f32 0.5, %v199_v52 }
  0x2f   :  { %v208_v55 = vmul.f32 5.9604645e-08, %v200_v47  ;;  %v209_v58 = vmul.f32 5.9604645e-08, %v201_v50  ;;  %v210_v61 = vmul.f32 5.9604645e-08, %v202_v53  ;;  %v211_v62 = vmul.f32 5.9604645e-08, %v203_v54 }
  0x30   :  { %v212_v0 = vmul.f32 5.9604645e-08, %v204_v56  ;;  %v213_v1 = vmul.f32 5.9604645e-08, %v205_v57  ;;  %v214_v3 = vmul.f32 5.9604645e-08, %v206_v59  ;;  %v215_v4 = vmul.f32 5.9604645e-08, %v207_v60 }
  0x31   :  { %v216_v63 = vmax.f32 %v208_v55, 1e-07  ;;  %v217_v2 = vmax.f32 %v209_v58, 1e-07  ;;  %v218_v5 = vmax.f32 %v210_v61, 1e-07 }
  0x32   :  { %v219_v6 = vmax.f32 %v211_v62, 1e-07  ;;  %v220_v8 = vmax.f32 %v212_v0, 1e-07  ;;  %v221_v9 = vmax.f32 %v213_v1, 1e-07 }
  0x33   :  { %v1223_v7 = vmin.f32 %v216_v63, 0.9999999  ;;  %v1225_v10 = vmin.f32 %v217_v2, 0.9999999  ;;  %v222_v12 = vmax.f32 %v214_v3, 1e-07 }
  0x34   :  { %v223_v13 = vmax.f32 %v215_v4, 1e-07  ;;  %v1230_v14 = vmin.f32 %v218_v5, 0.9999999  ;;  %v1232_v15 = vmin.f32 %v219_v6, 0.9999999 }
  0x35   :  { %v1228_v11 = vadd.f32 -0.5, %v1223_v7  ;;  %v1235_v16 = vadd.f32 -0.5, %v1225_v10  ;;  %v1237_v17 = vmin.f32 %v220_v8, 0.9999999  ;;  %v1239_v18 = vmin.f32 %v221_v9, 0.9999999 }
  0x36   :  { %v1242_v19 = vadd.f32 -0.5, %v1230_v14  ;;  %v1245_v20 = vadd.f32 -0.5, %v1232_v15  ;;  %v1251_v22 = vmin.f32 %v222_v12, 0.9999999  ;;  %v1253_v23 = vmin.f32 %v223_v13, 0.9999999 }
  0x37   :  { %v1249_v21 = vmul.f32 %v1228_v11, %v1228_v11  ;;  %v1256_v24 = vadd.f32 -0.5, %v1237_v17  ;;  %v1259_v25 = vadd.f32 -0.5, %v1239_v18  ;;  %v1263_v26 = vmul.f32 %v1235_v16, %v1235_v16 }
  0x38   :  { %v1267_v28 = vadd.f32 -0.5, %v1251_v22  ;;  %v1270_v29 = vadd.f32 -0.5, %v1253_v23  ;;  %v1274_v30 = vmul.f32 %v1242_v19, %v1242_v19  ;;  %v1278_v31 = vmul.f32 %v1245_v20, %v1245_v20 }
  0x39   :  { %v248_v27 = vmul.f32 -39.69683, %v1249_v21  ;;  %v249_v32 = vmul.f32 -39.69683, %v1263_v26  ;;  %v1283_v33 = vmul.f32 %v1256_v24, %v1256_v24  ;;  %v1287_v34 = vmul.f32 %v1259_v25, %v1259_v25 }
  0x3a   :  { %v250_v35 = vmul.f32 -39.69683, %v1274_v30  ;;  %v251_v36 = vmul.f32 -39.69683, %v1278_v31  ;;  %v1293_v38 = vmul.f32 %v1267_v28, %v1267_v28  ;;  %v1297_v39 = vmul.f32 %v1270_v29, %v1270_v29 }
  0x3b   :  { %v256_v37 = vadd.f32 220.9461, %v248_v27  ;;  %v252_v40 = vmul.f32 -39.69683, %v1283_v33  ;;  %v253_v41 = vmul.f32 -39.69683, %v1287_v34 }
  0x3c   :  { %v257_v42 = vadd.f32 220.9461, %v249_v32  ;;  %v254_v43 = vmul.f32 -39.69683, %v1293_v38  ;;  %v255_v44 = vmul.f32 -39.69683, %v1297_v39 }
  0x3d   :  { %v258_v45 = vadd.f32 220.9461, %v250_v35  ;;  %v259_v46 = vadd.f32 220.9461, %v251_v36  ;;  %v264_v47 = vmul.f32 %v256_v37, %v1249_v21  ;;  %v260_v48 = vadd.f32 220.9461, %v252_v40 }
  0x3e   :  { %v261_v49 = vadd.f32 220.9461, %v253_v41  ;;  %v265_v50 = vmul.f32 %v257_v42, %v1263_v26  ;;  %v262_v51 = vadd.f32 220.9461, %v254_v43  ;;  %v263_v52 = vadd.f32 220.9461, %v255_v44 }
  0x3f   :  { %v266_v53 = vmul.f32 %v258_v45, %v1274_v30  ;;  %v267_v54 = vmul.f32 %v259_v46, %v1278_v31  ;;  %v272_v55 = vadd.f32 -275.9285, %v264_v47  ;;  %v336_v56 = vmul.f32 -54.476097, %v1249_v21 }
  0x40   :  { %v268_v57 = vmul.f32 %v260_v48, %v1283_v33  ;;  %v337_v58 = vmul.f32 -54.476097, %v1263_v26  ;;  %v338_v59 = vmul.f32 -54.476097, %v1274_v30  ;;  %v339_v60 = vmul.f32 -54.476097, %v1278_v31 }
  0x41   :  { %v269_v61 = vmul.f32 %v261_v49, %v1287_v34  ;;  %v273_v62 = vadd.f32 -275.9285, %v265_v50  ;;  %v340_v63 = vmul.f32 -54.476097, %v1283_v33  ;;  %v341_v0 = vmul.f32 -54.476097, %v1287_v34 }
  0x42   :  { %v270_v1 = vmul.f32 %v262_v51, %v1293_v38  ;;  %v342_v2 = vmul.f32 -54.476097, %v1293_v38  ;;  %v344_v3 = vadd.f32 161.58583, %v336_v56  ;;  %v345_v4 = vadd.f32 161.58583, %v337_v58 }
  0x43   :  { %v271_v5 = vmul.f32 %v263_v52, %v1297_v39  ;;  %v346_v6 = vadd.f32 161.58583, %v338_v59  ;;  %v347_v8 = vadd.f32 161.58583, %v339_v60  ;;  %v348_v9 = vadd.f32 161.58583, %v340_v63 }
  0x44   :  { %v274_v12 = vadd.f32 -275.9285, %v266_v53  ;;  %v343_v13 = vmul.f32 -54.476097, %v1297_v39  ;;  %v349_v27 = vadd.f32 161.58583, %v341_v0  ;;  %v352_v32 = vmul.f32 %v344_v3, %v1249_v21 }
  0x45   :  { %v275_v35 = vadd.f32 -275.9285, %v267_v54  ;;  %v353_v36 = vmul.f32 %v345_v4, %v1263_v26  ;;  %v354_v37 = vmul.f32 %v346_v6, %v1274_v30  ;;  %v355_v40 = vmul.f32 %v347_v8, %v1278_v31 }
  0x46   :  { %v276_v41 = vadd.f32 -275.9285, %v268_v57  ;;  %v277_v42 = vadd.f32 -275.9285, %v269_v61  ;;  %v360_v43 = vadd.f32 -155.69897, %v352_v32  ;;  %v356_v45 = vmul.f32 %v348_v9, %v1283_v33 }
  0x47   :  { %v350_v44 = vadd.f32 161.58583, %v342_v2  ;;  %v361_v46 = vadd.f32 -155.69897, %v353_v36  ;;  %v362_v47 = vadd.f32 -155.69897, %v354_v37  ;;  %v357_v49 = vmul.f32 %v349_v27, %v1287_v34 }
  0x48   :  { %v351_v48 = vadd.f32 161.58583, %v343_v13  ;;  %v363_v50 = vadd.f32 -155.69897, %v355_v40  ;;  %v368_v51 = vmul.f32 %v360_v43, %v1249_v21  ;;  %v278_v52 = vadd.f32 -275.9285, %v270_v1 }
  0x49   :  { %v279_v53 = vadd.f32 -275.9285, %v271_v5  ;;  %v280_v54 = vmul.f32 %v272_v55, %v1249_v21  ;;  %v369_v56 = vmul.f32 %v361_v46, %v1263_v26  ;;  %v281_v57 = vmul.f32 %v273_v62, %v1263_v26 }
  0x4a   :  { %v282_v58 = vmul.f32 %v274_v12, %v1274_v30  ;;  %v370_v59 = vmul.f32 %v362_v47, %v1274_v30  ;;  %v376_v60 = vadd.f32 66.801315, %v368_v51  ;;  %v283_v61 = vmul.f32 %v275_v35, %v1278_v31 }
  0x4b   :  { %v358_v63 = vmul.f32 %v350_v44, %v1293_v38  ;;  %v364_v0 = vadd.f32 -155.69897, %v356_v45  ;;  %v377_v2 = vadd.f32 66.801315, %v369_v56  ;;  %v359_v1 = vmul.f32 %v351_v48, %v1297_v39 }
  0x4c   :  { %v365_v3 = vadd.f32 -155.69897, %v357_v49  ;;  %v371_v55 = vmul.f32 %v363_v50, %v1278_v31  ;;  %v384_v4 = vmul.f32 %v376_v60, %v1249_v21  ;;  %v284_v62 = vmul.f32 %v276_v41, %v1283_v33 }
  0x4d   :  { %v285_v5 = vmul.f32 %v277_v42, %v1287_v34  ;;  %v286_v6 = vmul.f32 %v278_v52, %v1293_v38  ;;  %v288_v8 = vadd.f32 138.35776, %v280_v54  ;;  %v287_v9 = vmul.f32 %v279_v53, %v1297_v39 }
  0x4e   :  { %v378_v12 = vadd.f32 66.801315, %v370_v59  ;;  %v385_v13 = vmul.f32 %v377_v2, %v1263_v26  ;;  %v392_v27 = vadd.f32 -13.280682, %v384_v4  ;;  %v289_v32 = vadd.f32 138.35776, %v281_v57 }
  0x4f   :  { %v290_v35 = vadd.f32 138.35776, %v282_v58  ;;  %v366_v36 = vadd.f32 -155.69897, %v358_v63  ;;  %v372_v37 = vmul.f32 %v364_v0, %v1283_v33  ;;  %v291_v40 = vadd.f32 138.35776, %v283_v61 }
  0x50   :  { %v367_v43 = vadd.f32 -155.69897, %v359_v1  ;;  %v373_v41 = vmul.f32 %v365_v3, %v1287_v34  ;;  %v379_v44 = vadd.f32 66.801315, %v371_v55  ;;  %v292_v42 = vadd.f32 138.35776, %v284_v62 }
  0x51   :  { %v293_v45 = vadd.f32 138.35776, %v285_v5  ;;  %v294_v46 = vadd.f32 138.35776, %v286_v6  ;;  %v296_v47 = vmul.f32 %v288_v8, %v1249_v21  ;;  %v295_v48 = vadd.f32 138.35776, %v287_v9 }
  0x52   :  { %v386_v49 = vmul.f32 %v378_v12, %v1274_v30  ;;  %v393_v50 = vadd.f32 -13.280682, %v385_v13  ;;  %v400_v51 = vmul.f32 %v392_v27, %v1249_v21  ;;  %v297_v52 = vmul.f32 %v289_v32, %v1263_v26 }
  0x53   :  { %v298_v53 = vmul.f32 %v290_v35, %v1274_v30  ;;  %v374_v54 = vmul.f32 %v366_v36, %v1293_v38  ;;  %v380_v56 = vadd.f32 66.801315, %v372_v37  ;;  %v299_v57 = vmul.f32 %v291_v40, %v1278_v31 }
  0x54   :  { %v375_v58 = vmul.f32 %v367_v43, %v1297_v39  ;;  %v381_v59 = vadd.f32 66.801315, %v373_v41  ;;  %v387_v60 = vmul.f32 %v379_v44, %v1278_v31  ;;  %v300_v61 = vmul.f32 %v292_v42, %v1283_v33 }
  0x55   :  { %v301_v63 = vmul.f32 %v293_v45, %v1287_v34  ;;  %v302_v0 = vmul.f32 %v294_v46, %v1293_v38  ;;  %v304_v2 = vadd.f32 -30.664799, %v296_v47  ;;  %v303_v1 = vmul.f32 %v295_v48, %v1297_v39 }
  0x56   :  { %v394_v3 = vadd.f32 -13.280682, %v386_v49  ;;  %v401_v55 = vmul.f32 %v393_v50, %v1263_v26  ;;  %v1357_v4 = vadd.f32 1.0, %v400_v51  ;;  %v305_v62 = vadd.f32 -30.664799, %v297_v52 }
  0x57   :  { %v306_v5 = vadd.f32 -30.664799, %v298_v53  ;;  %v382_v6 = vadd.f32 66.801315, %v374_v54  ;;  %v388_v8 = vmul.f32 %v380_v56, %v1283_v33  ;;  %v307_v9 = vadd.f32 -30.664799, %v299_v57 }
  0x58   :  { %v383_v12 = vadd.f32 66.801315, %v375_v58  ;;  %v389_v13 = vmul.f32 %v381_v59, %v1287_v34  ;;  %v395_v27 = vadd.f32 -13.280682, %v387_v60  ;;  %v308_v32 = vadd.f32 -30.664799, %v300_v61 }
  0x59   :  { %v309_v35 = vadd.f32 -30.664799, %v301_v63  ;;  %v310_v36 = vadd.f32 -30.664799, %v302_v0  ;;  %v312_v37 = vmul.f32 %v304_v2, %v1249_v21  ;;  %v311_v40 = vadd.f32 -30.664799, %v303_v1 }
  0x5a   :  { %v402_v43 = vmul.f32 %v394_v3, %v1274_v30  ;;  %v1363_v41 = vadd.f32 1.0, %v401_v55  ;;  %1079 = vrcp.f32 %v1357_v4  ;;  %v313_v44 = vmul.f32 %v305_v62, %v1263_v26 }
  0x5b   :  { %v390_v42 = vmul.f32 %v382_v6, %v1293_v38  ;;  %v396_v45 = vadd.f32 -13.280682, %v388_v8  ;;  %v314_v46 = vmul.f32 %v306_v5, %v1274_v30  ;;  %v391_v47 = vmul.f32 %v383_v12, %v1297_v39 }
  0x5c   :  { %v397_v48 = vadd.f32 -13.280682, %v389_v13  ;;  %v403_v49 = vmul.f32 %v395_v27, %v1278_v31  ;;  %v315_v21 = vmul.f32 %v307_v9, %v1278_v31  ;;  %v316_v50 = vmul.f32 %v308_v32, %v1283_v33 }
  0x5d   :  { %v317_v51 = vmul.f32 %v309_v35, %v1287_v34  ;;  %v318_v52 = vmul.f32 %v310_v36, %v1293_v38  ;;  %v319_v26 = vmul.f32 %v311_v40, %v1297_v39  ;;  %v320_v53 = vadd.f32 2.5066283, %v312_v37 }
  0x5e   :  { %v1376_v54 = vadd.f32 1.0, %v402_v43  ;;  %1081 = vrcp.f32 %v1363_v41  ;;  %v321_v30 = vadd.f32 2.5066283, %v313_v44  ;;  %v398_v56 = vadd.f32 -13.280682, %v390_v42 }
  0x5f   :  { %v404_v57 = vmul.f32 %v396_v45, %v1283_v33  ;;  %v322_v31 = vadd.f32 2.5066283, %v314_v46  ;;  %v399_v59 = vadd.f32 -13.280682, %v391_v47  ;;  %v405_v60 = vmul.f32 %v397_v48, %v1287_v34 }
  0x60   :  { %v1380_v58 = vpop.eup %1079  ;;  %v1383_v61 = vadd.f32 1.0, %v403_v49  ;;  %v323_v63 = vadd.f32 2.5066283, %v315_v21  ;;  %v324_v0 = vadd.f32 2.5066283, %v316_v50  ;;  %v1386_v55 = vmul.f32 %v1228_v11, %v320_v53 }
  0x61   :  { %v325_v2 = vadd.f32 2.5066283, %v317_v51  ;;  %v326_v1 = vadd.f32 2.5066283, %v318_v52  ;;  %v327_v3 = vadd.f32 2.5066283, %v319_v26  ;;  %1083 = vrcp.f32 %v1376_v54 }
  0x62   :  { %v1390_v33 = vmul.f32 %v1235_v16, %v321_v30  ;;  %v406_v62 = vmul.f32 %v398_v56, %v1293_v38  ;;  %v1393_v5 = vadd.f32 1.0, %v404_v57  ;;  %v417_v34 = vmul.f32 %v1380_v58, %v1357_v4 }
  0x63   :  { %v1400_v8 = vmul.f32 %v1242_v19, %v322_v31  ;;  %v407_v11 = vmul.f32 %v399_v59, %v1297_v39  ;;  %v1403_v9 = vadd.f32 1.0, %v405_v60  ;;  %1085 = vrcp.f32 %v1383_v61 }
  0x64   :  { %v1397_v6 = vpop.eup %1081  ;;  %v1407_v16 = vmul.f32 %v1245_v20, %v323_v63  ;;  %v1410_v38 = vmul.f32 %v1256_v24, %v324_v0  ;;  %v427_v12 = vand.u32 2147483648, %v1357_v4  ;;  %v442_v13 = vand.u32 2147483648, %v1363_v41 }
  0x65   :  { %v1415_v27 = vmul.f32 %v1259_v25, %v325_v2  ;;  %v1418_v19 = vmul.f32 %v1267_v28, %v326_v1  ;;  %v1421_v39 = vmul.f32 %v1270_v29, %v327_v3  ;;  %v457_v32 = vand.u32 2147483648, %v1376_v54 }
  0x66   :  { %v1424_v20 = vadd.f32 1.0, %v406_v62  ;;  %v418_v35 = vsub.f32 1.0, %v417_v34  ;;  %v432_v24 = vmul.f32 %v1397_v6, %v1363_v41  ;;  %1087 = vrcp.f32 %v1393_v5 }
  0x67   :  { %v1429_v36 = vpop.eup %1083  ;;  %v1431_v25 = vadd.f32 1.0, %v407_v11  ;;  %vm421_vm0 = vweird.f32 %v1357_v4  ;;  %v472_v28 = vand.u32 2147483648, %v1383_v61  ;;  %1089 = vrcp.f32 %v1403_v9 }
  0x68   :  { %v425_v29 = vand.u32 2147483647, %v1357_v4  ;;  %v1437_v37 = vor.u32 1.1754944e-38, %v427_v12  ;;  %v440_v40 = vand.u32 2147483647, %v1363_v41  ;;  %v1440_v43 = vor.u32 1.1754944e-38, %v442_v13 }
  0x69   :  { %v1442_v44 = vpop.eup %1085  ;;  %vm436_vm1 = vweird.f32 %v1363_v41  ;;  %v455_v42 = vand.u32 2147483647, %v1376_v54  ;;  %v1446_v45 = vor.u32 1.1754944e-38, %v457_v32  ;;  %v470_v46 = vand.u32 2147483647, %v1383_v61 }
  0x6a   :  { %v487_v47 = vand.u32 2147483648, %v1393_v5  ;;  %v419_v48 = vmul.f32 %v1380_v58, %v418_v35  ;;  %vm422_vm2 = vweird.f32 %v1380_v58  ;;  %v433_v49 = vsub.f32 1.0, %v432_v24 }
  0x6b   :  { %v447_v21 = vmul.f32 %v1429_v36, %v1376_v54  ;;  %vm437_vm3 = vweird.f32 %v1397_v6  ;;  %v1455_v50 = vor.u32 1.1754944e-38, %v472_v28  ;;  %v485_v51 = vand.u32 2147483647, %v1393_v5  ;;  %vm1486_vm8 = vmor %vm421_vm0, %vm422_vm2 }
  0x6c   :  { %v500_v52 = vand.u32 2147483647, %v1403_v9  ;;  %v1459_v26 = vpop.eup %1087  ;;  %vm1461_vm4 = vcmp.eq.f32.partialorder %v425_v29, 8.507059e+37  ;;  %vm451_vm5 = vweird.f32 %v1376_v54  ;;  %v462_v30 = vmul.f32 %v1442_v44, %v1383_v61  ;;  %vm1536_vm12 = vmor %vm436_vm1, %vm437_vm3 }
  0x6d   :  { %1091 = vrcp.f32 %v1424_v20  ;;  %v536_v56 = vsub.f32 1.0, %v1223_v7  ;;  %v537_v57 = vsub.f32 1.0, %v1225_v10  ;;  %v1471_v31 = vpop.eup %1089  ;;  %vm452_vm6 = vweird.f32 %v1429_v36 }
  0x6e   :  { %v1474_v59 = vor.u32 1.1754944e-38, %v487_v47  ;;  %v538_v60 = vsub.f32 1.0, %v1230_v14  ;;  %v539_v63 = vsub.f32 1.0, %v1232_v15  ;;  %v420_v0 = vadd.f32 %v1380_v58, %v419_v48  ;;  %vm1571_vm15 = vmor %vm451_vm5, %vm452_vm6 }
  0x6f   :  { %v434_v2 = vmul.f32 %v1397_v6, %v433_v49  ;;  %v448_v1 = vsub.f32 1.0, %v447_v21  ;;  %vm466_vm7 = vweird.f32 %v1383_v61  ;;  %v540_v3 = vsub.f32 1.0, %v1237_v17 }
  0x70   :  { %vm1490_vm9 = vcmp.eq.f32.partialorder %v440_v40, 8.507059e+37  ;;  %v477_v11 = vmul.f32 %v1459_v26, %v1393_v5  ;;  %v541_v12 = vsub.f32 1.0, %v1239_v18  ;;  %v1498_v13 = vmin.f32 %v1223_v7, %v536_v56 }
  0x71   :  { %v1501_v32 = vmin.f32 %v1225_v10, %v537_v57  ;;  %v463_v4 = vsub.f32 1.0, %v462_v30  ;;  %v492_v35 = vmul.f32 %v1471_v31, %v1403_v9  ;;  %v542_v24 = vsub.f32 1.0, %v1251_v22 }
  0x72   :  { %v1507_v28 = vmin.f32 %v1230_v14, %v538_v60  ;;  %vm481_vm10 = vweird.f32 %v1393_v5  ;;  %v502_v29 = vand.u32 2147483648, %v1403_v9  ;;  %1093 = vrcp.f32 %v1431_v25 }
  0x73   :  { %2227 = vst [vmem:[#allocation10_spill] sm:$0xff] %v1501_v32  ;;  %v543_v40 = vsub.f32 1.0, %v1253_v23  ;;  %v1514_v47 = vmin.f32 %v1232_v15, %v539_v63  ;;  %v1516_v48 = vpop.eup %1091  ;;  %v424_v49 = vsel %vm1486_vm8, %v1380_v58, %v420_v0  ;;  %v449_v21 = vmul.f32 %v1429_v36, %v448_v1 }
  0x74   :  { %2228 = vst [vmem:[#allocation11_spill] sm:$0xff] %v1507_v28  ;;  %vm496_vm11 = vweird.f32 %v1403_v9  ;;  %v1524_v30 = vmin.f32 %v1237_v17, %v540_v3  ;;  %1095 = vlog2.f32 %v1498_v13  ;;  %v435_v56 = vadd.f32 %v1397_v6, %v434_v2 }
  0x75   :  { %2229 = vst [vmem:[#allocation12_spill] sm:$0xff] %v1514_v47  ;;  %v478_v57 = vsub.f32 1.0, %v477_v11  ;;  %v1529_v60 = vmin.f32 %v1239_v18, %v541_v12  ;;  %1097 = vlog2.f32 %v1501_v32  ;;  %v464_v63 = vmul.f32 %v1442_v44, %v463_v4 }
  0x76   :  { %2230 = vst [vmem:[#allocation13_spill] sm:$0xff] %v1524_v30  ;;  %v493_v0 = vsub.f32 1.0, %v492_v35  ;;  %v1542_v1 = vmin.f32 %v1251_v22, %v542_v24  ;;  %1099 = vlog2.f32 %v1507_v28  ;;  %vm467_vm13 = vweird.f32 %v1442_v44 }
  0x77   :  { %2231 = vst [vmem:[#allocation14_spill] sm:$0xff] %v1529_v60  ;;  %v507_v2 = vmul.f32 %v1516_v48, %v1424_v20  ;;  %v1549_v3 = vmin.f32 %v1253_v23, %v543_v40  ;;  %1101 = vlog2.f32 %v1514_v47  ;;  %v1553_v41 = vadd.f32 %v1429_v36, %v449_v21 }
  0x78   :  { %2234 = vst [vmem:[#allocation15_spill] sm:$0xff] %v1542_v1  ;;  %vm482_vm14 = vweird.f32 %v1459_v26  ;;  %v1556_v62 = vor.u32 1.1754944e-38, %v502_v29  ;;  %1103 = vlog2.f32 %v1524_v30  ;;  %v1559_v11 = vpop.eup %1093  ;;  %v429_v12 = vsel %vm1461_vm4, %v1437_v37, %v424_v49  ;;  %vm1603_vm4 = vmor %vm466_vm7, %vm467_vm13 }
  0x79   :  { %2235 = vst [vmem:[#allocation16_spill] sm:$0xff] %v1549_v3  ;;  %v439_v4 = vsel %vm1536_vm12, %v1397_v6, %v435_v56  ;;  %vm1577_vm0 = vcmp.eq.f32.partialorder %v455_v42, 8.507059e+37  ;;  %v479_v37 = vmul.f32 %v1459_v26, %v478_v57  ;;  %1105 = vlog2.f32 %v1529_v60  ;;  %vm1636_vm7 = vmor %vm481_vm10, %vm482_vm14 }
  0x7a   :  { %v1096_v53 = vpop.eup %1095  ;;  %v465_v6 = vadd.f32 %v1442_v44, %v464_v63  ;;  %vm1586_vm1 = vcmp.eq.f32.partialorder %v470_v46, 8.507059e+37  ;;  %vm1592_vm2 = vcmp.eq.f32.partialorder %v485_v51, 8.507059e+37  ;;  %v494_v42 = vmul.f32 %v1471_v31, %v493_v0 }
  0x7b   :  { %vm511_vm3 = vweird.f32 %v1424_v20  ;;  %1107 = vlog2.f32 %v1542_v1  ;;  %v1098_v40 = vpop.eup %1097  ;;  %vm497_vm5 = vweird.f32 %v1471_v31  ;;  %vm1610_vm6 = vcmp.eq.f32.partialorder %v500_v52, 8.507059e+37 }
  0x7c   :  { %v508_v49 = vsub.f32 1.0, %v507_v2  ;;  %v553_v21 = vmul.f32 0.6931472, %v1096_v53  ;;  %1109 = vlog2.f32 %v1549_v3  ;;  %v1100_v56 = vpop.eup %1099  ;;  %v1616_v57 = vmul.f32 %v429_v12, %v1386_v55  ;;  %vm1647_vm8 = vmor %vm496_vm11, %vm497_vm5 }
  0x7d   :  { %v444_v61 = vsel %vm1490_vm9, %v1440_v43, %v439_v4  ;;  %v454_v52 = vsel %vm1571_vm15, %v1429_v36, %v1553_v41  ;;  %v555_v58 = vmul.f32 0.6931472, %v1098_v40  ;;  %v1102_v63 = vpop.eup %1101  ;;  %v480_v0 = vadd.f32 %v1459_v26, %v479_v37 }
  0x7e   :  { %2248 = vst [vmem:[#allocation17_spill] sm:$0xff] %v1616_v57  ;;  %v557_v53 = vmul.f32 0.6931472, %v1100_v56  ;;  %v1627_v3 = vmul.f32 -2.0, %v553_v21  ;;  %v1104_v55 = vpop.eup %1103  ;;  %v469_v34 = vsel %vm1603_vm4, %v1442_v44, %v465_v6  ;;  %v495_v43 = vadd.f32 %v1471_v31, %v494_v42 }
  0x7f   :  { %v559_v41 = vmul.f32 0.6931472, %v1102_v63  ;;  %v1641_v12 = vmul.f32 -2.0, %v555_v58  ;;  %v1106_v4 = vpop.eup %1105  ;;  %v509_v5 = vmul.f32 %v1516_v48, %v508_v49  ;;  %v561_v35 = vmul.f32 0.6931472, %v1104_v55 }
  0x80   :  { %v1652_v37 = vmul.f32 -2.0, %v557_v53  ;;  %1111 = vrsqrt.f32 %v1627_v3  ;;  %vm512_vm9 = vweird.f32 %v1516_v48  ;;  %v522_v42 = vmul.f32 %v1559_v11, %v1431_v25 }
  0x81   :  { %v1108_v6 = vpop.eup %1107  ;;  %v563_v40 = vmul.f32 0.6931472, %v1106_v4  ;;  %v1658_v46 = vmul.f32 -2.0, %v559_v41  ;;  %v484_v21 = vsel %vm1636_vm7, %v1459_v26, %v480_v0  ;;  %v1663_v56 = vmul.f32 -2.0, %v561_v35  ;;  %vm1691_vm10 = vmor %vm511_vm3, %vm512_vm9 }
  0x82   :  { %v1110_v9 = vpop.eup %1109  ;;  %v565_v49 = vmul.f32 0.6931472, %v1108_v6  ;;  %1113 = vrsqrt.f32 %v1641_v12  ;;  %v499_v58 = vsel %vm1647_vm8, %v1471_v31, %v495_v43  ;;  %v517_v63 = vand.u32 2147483648, %v1424_v20 }
  0x83   :  { %v567_v53 = vmul.f32 0.6931472, %v1110_v9  ;;  %v1670_v55 = vmul.f32 -2.0, %v563_v40  ;;  %v1673_v41 = vadd.f32 %v1516_v48, %v509_v5  ;;  %v532_v36 = vand.u32 2147483648, %v1431_v25 }
  0x84   :  { %v1676_v26 = vmul.f32 -2.0, %v565_v49  ;;  %1115 = vrsqrt.f32 %v1652_v37  ;;  %v1680_v0 = vmul.f32 %v444_v61, %v1390_v33  ;;  %v1685_v31 = vsel %vm1577_vm0, %v1446_v45, %v454_v52 }
  0x85   :  { %v523_v4 = vsub.f32 1.0, %v522_v42  ;;  %1117 = vrsqrt.f32 %v1658_v46  ;;  %v1699_v33 = vsel %vm1586_vm1, %v1455_v50, %v469_v34  ;;  %v1704_v45 = vsel %vm1592_vm2, %v1474_v59, %v484_v21 }
  0x86   :  { %2253 = vst [vmem:[#allocation18_spill] sm:$0xff] %v1680_v0  ;;  %v1112_v44 = vpop.eup %1111  ;;  %v1706_v24 = vmul.f32 -2.0, %v567_v53  ;;  %1119 = vrsqrt.f32 %v1663_v56  ;;  %v1712_v61 = vsel %vm1610_vm6, %v1556_v62, %v499_v58  ;;  %v1714_v52 = vor.u32 1.1754944e-38, %v517_v63 }
  0x87   :  { %v577_v29 = vmul.f32 %v1112_v44, %v1627_v3  ;;  %1121 = vrsqrt.f32 %v1670_v55  ;;  %v1723_v34 = vor.u32 1.1754944e-38, %v532_v36  ;;  %v1727_v62 = vmul.f32 %v1559_v11, %v523_v4 }
  0x88   :  { %v1114_v50 = vpop.eup %1113  ;;  %1123 = vrsqrt.f32 %v1676_v26  ;;  %vm583_vm11 = vcmp.eq.f32.partialorder %v1627_v3, inf  ;;  %vm585_vm12 = vcmp.eq.f32.partialorder %v1627_v3, 0.0  ;;  %v586_v6 = vand.u32 2147483648, %v1627_v3 }
  0x89   :  { %v578_v51 = vmul.f32 %v1112_v44, %v577_v29  ;;  %v589_v5 = vmul.f32 %v1114_v50, %v1641_v12  ;;  %vm595_vm13 = vcmp.eq.f32.partialorder %v1641_v12, inf  ;;  %1125 = vrsqrt.f32 %v1706_v24 }
  0x8a   :  { %v1116_v35 = vpop.eup %1115  ;;  %vm597_vm14 = vcmp.eq.f32.partialorder %v1641_v12, 0.0  ;;  %v598_v21 = vand.u32 2147483648, %v1641_v12  ;;  %vm607_vm15 = vcmp.eq.f32.partialorder %v1652_v37, inf  ;;  %vm609_vm0 = vcmp.eq.f32.partialorder %v1652_v37, 0.0 }
  0x8b   :  { %v1118_v42 = vpop.eup %1117  ;;  %v579_v40 = vmul.f32 0.5, %v578_v51  ;;  %v590_v9 = vmul.f32 %v1114_v50, %v589_v5  ;;  %v601_v49 = vmul.f32 %v1116_v35, %v1652_v37  ;;  %vm619_vm1 = vcmp.eq.f32.partialorder %v1658_v46, inf }
  0x8c   :  { %v1120_v58 = vpop.eup %1119  ;;  %v613_v53 = vmul.f32 %v1118_v42, %v1658_v46  ;;  %vm621_vm2 = vcmp.eq.f32.partialorder %v1658_v46, 0.0  ;;  %vm631_vm3 = vcmp.eq.f32.partialorder %v1663_v56, inf  ;;  %v646_v4 = vand.u32 2147483648, %v1670_v55 }
  0x8d   :  { %v1122_v29 = vpop.eup %1121  ;;  %v580_v51 = vsub.f32 1.5, %v579_v40  ;;  %v591_v5 = vmul.f32 0.5, %v590_v9  ;;  %v602_v59 = vmul.f32 %v1116_v35, %v601_v49  ;;  %v625_v54 = vmul.f32 %v1120_v58, %v1663_v56 }
  0x8e   :  { %v1124_v2 = vpop.eup %1123  ;;  %v614_v0 = vmul.f32 %v1118_v42, %v613_v53  ;;  %v637_v36 = vmul.f32 %v1122_v29, %v1670_v55  ;;  %vm633_vm4 = vcmp.eq.f32.partialorder %v1663_v56, 0.0  ;;  %vm643_vm5 = vcmp.eq.f32.partialorder %v1670_v55, inf }
  0x8f   :  { %v581_v9 = vmul.f32 %v1112_v44, %v580_v51  ;;  %v592_v49 = vsub.f32 1.5, %v591_v5  ;;  %v603_v63 = vmul.f32 0.5, %v602_v59  ;;  %v626_v57 = vmul.f32 %v1120_v58, %v625_v54  ;;  %v1126_v1 = vpop.eup %1125 }
  0x90   :  { %v615_v53 = vmul.f32 0.5, %v614_v0  ;;  %v638_v60 = vmul.f32 %v1122_v29, %v637_v36  ;;  %vm645_vm6 = vcmp.eq.f32.partialorder %v1670_v55, 0.0  ;;  %v649_v30 = vmul.f32 %v1124_v2, %v1676_v26 }
  0x91   :  { %v582_v28 = vmul.f32 %v581_v9, %v1627_v3  ;;  %v593_v40 = vmul.f32 %v1114_v50, %v592_v49  ;;  %v604_v44 = vsub.f32 1.5, %v603_v63  ;;  %v627_v51 = vmul.f32 0.5, %v626_v57 }
  0x92   :  { %vm655_vm7 = vcmp.eq.f32.partialorder %v1676_v26, inf  ;;  %v616_v59 = vsub.f32 1.5, %v615_v53  ;;  %v639_v54 = vmul.f32 0.5, %v638_v60  ;;  %v650_v5 = vmul.f32 %v1124_v2, %v649_v30 }
  0x93   :  { %vm657_vm8 = vcmp.eq.f32.partialorder %v1676_v26, 0.0  ;;  %v661_v0 = vmul.f32 %v1126_v1, %v1706_v24  ;;  %v584_v36 = vsel %vm583_vm11, %v1627_v3, %v582_v28  ;;  %v594_v47 = vmul.f32 %v593_v40, %v1641_v12 }
  0x94   :  { %v605_v32 = vmul.f32 %v1116_v35, %v604_v44  ;;  %v628_v9 = vsub.f32 1.5, %v627_v51  ;;  %v1766_v57 = vsel %vm585_vm12, %v586_v6, %v584_v36  ;;  %v617_v50 = vmul.f32 %v1118_v42, %v616_v59 }
  0x95   :  { %v640_v63 = vsub.f32 1.5, %v639_v54  ;;  %v651_v60 = vmul.f32 0.5, %v650_v5  ;;  %vm667_vm9 = vcmp.eq.f32.partialorder %v1706_v24, inf  ;;  %v596_v30 = vsel %vm595_vm13, %v1641_v12, %v594_v47 }
  0x96   :  { %v606_v49 = vmul.f32 %v605_v32, %v1652_v37  ;;  %v629_v28 = vmul.f32 %v1120_v58, %v628_v9  ;;  %v662_v53 = vmul.f32 %v1126_v1, %v661_v0  ;;  %vm669_vm11 = vcmp.eq.f32.partialorder %v1706_v24, 0.0 }
  0x97   :  { %v1776_v3 = vsel %vm597_vm14, %v598_v21, %v596_v30  ;;  %v618_v35 = vmul.f32 %v617_v50, %v1658_v46  ;;  %v641_v6 = vmul.f32 %v1122_v29, %v640_v63  ;;  %v652_v42 = vsub.f32 1.5, %v651_v60 }
  0x98   :  { %v608_v40 = vsel %vm607_vm15, %v1652_v37, %v606_v49  ;;  %v630_v47 = vmul.f32 %v629_v28, %v1663_v56  ;;  %v663_v44 = vmul.f32 0.5, %v662_v53  ;;  %v672_v32 = vmul.f32 -0.007784894, %v1766_v57 }
  0x99   :  { %v2256_v58 = vand.u32 2147483648, %v1652_v37  ;;  %v620_v21 = vsel %vm619_vm1, %v1658_v46, %v618_v35  ;;  %v642_v29 = vmul.f32 %v641_v6, %v1670_v55  ;;  %v653_v51 = vmul.f32 %v1124_v2, %v652_v42 }
  0x9a   :  { %v2257_v59 = vand.u32 2147483648, %v1658_v46  ;;  %v632_v5 = vsel %vm631_vm3, %v1663_v56, %v630_v47  ;;  %v664_v37 = vsub.f32 1.5, %v663_v44  ;;  %v673_v0 = vmul.f32 -0.007784894, %v1776_v3 }
  0x9b   :  { %v1788_v12 = vsel %vm609_vm0, %v2256_v58, %v608_v40  ;;  %v2258_v36 = vand.u32 2147483648, %v1663_v56  ;;  %v644_v2 = vsel %vm643_vm5, %v1670_v55, %v642_v29  ;;  %v654_v46 = vmul.f32 %v653_v51, %v1676_v26 }
  0x9c   :  { %v1798_v54 = vsel %vm621_vm2, %v2257_v59, %v620_v21  ;;  %v674_v50 = vmul.f32 -0.007784894, %v1788_v12  ;;  %v1817_v63 = vsel %vm645_vm6, %v646_v4, %v644_v2  ;;  %v665_v60 = vmul.f32 %v1126_v1, %v664_v37 }
  0x9d   :  { %v1808_v9 = vsel %vm633_vm4, %v2258_v36, %v632_v5  ;;  %v675_v30 = vmul.f32 -0.007784894, %v1798_v54  ;;  %vm526_vm12 = vweird.f32 %v1431_v25  ;;  %vm527_vm13 = vweird.f32 %v1559_v11 }
  0x9e   :  { %v676_v49 = vmul.f32 -0.007784894, %v1808_v9  ;;  %v656_v56 = vsel %vm655_vm7, %v1676_v26, %v654_v46  ;;  %v677_v28 = vmul.f32 -0.007784894, %v1817_v63  ;;  %v680_v53 = vadd.f32 -0.32239646, %v672_v32  ;;  %vm1878_vm0 = vmor %vm526_vm12, %vm527_vm13 }
  0x9f   :  { %v681_v35 = vadd.f32 -0.32239646, %v673_v0  ;;  %v2259_v55 = vand.u32 2147483648, %v1676_v26  ;;  %v666_v4 = vmul.f32 %v665_v60, %v1706_v24  ;;  %v682_v6 = vadd.f32 -0.32239646, %v674_v50 }
  0xa0   :  { %v683_v42 = vadd.f32 -0.32239646, %v675_v30  ;;  %v684_v47 = vadd.f32 -0.32239646, %v676_v49  ;;  %v685_v44 = vadd.f32 -0.32239646, %v677_v28  ;;  %v688_v58 = vmul.f32 %v680_v53, %v1766_v57 }
  0xa1   :  { %v1831_v1 = vsel %vm657_vm8, %v2259_v55, %v656_v56  ;;  %v2260_v21 = vand.u32 2147483647, %v1424_v20  ;;  %v668_v26 = vsel %vm667_vm9, %v1706_v24, %v666_v4  ;;  %v689_v29 = vmul.f32 %v681_v35, %v1776_v3 }
  0xa2   :  { %v678_v40 = vmul.f32 -0.007784894, %v1831_v1  ;;  %v690_v51 = vmul.f32 %v682_v6, %v1788_v12  ;;  %v691_v59 = vmul.f32 %v683_v42, %v1798_v54  ;;  %v2263_v5 = vand.u32 2147483648, %v1706_v24 }
  0xa3   :  { %vm1838_vm14 = vcmp.eq.f32.partialorder %v2260_v21, 8.507059e+37  ;;  %v692_v0 = vmul.f32 %v684_v47, %v1808_v9  ;;  %v693_v36 = vmul.f32 %v685_v44, %v1817_v63  ;;  %v525_v2 = vadd.f32 %v1559_v11, %v1727_v62 }
  0xa4   :  { %v1852_v37 = vsel %vm669_vm11, %v2263_v5, %v668_v26  ;;  %v686_v20 = vadd.f32 -0.32239646, %v678_v40  ;;  %v696_v50 = vadd.f32 -2.4007583, %v688_v58  ;;  %v697_v60 = vadd.f32 -2.4007583, %v689_v29 }
  0xa5   :  { %v679_v46 = vmul.f32 -0.007784894, %v1852_v37  ;;  %v698_v49 = vadd.f32 -2.4007583, %v690_v51  ;;  %v699_v56 = vadd.f32 -2.4007583, %v691_v59  ;;  %v1914_v32 = vmul.f32 %v1704_v45, %v1410_v38 }
  0xa6   :  { %v694_v30 = vmul.f32 %v686_v20, %v1831_v1  ;;  %v700_v28 = vadd.f32 -2.4007583, %v692_v0  ;;  %v2264_v24 = vand.u32 2147483647, %v1431_v25  ;;  %v701_v55 = vadd.f32 -2.4007583, %v693_v36 }
  0xa7   :  { %v687_v35 = vadd.f32 -0.32239646, %v679_v46  ;;  %v704_v4 = vmul.f32 %v696_v50, %v1766_v57  ;;  %v705_v62 = vmul.f32 %v697_v60, %v1776_v3  ;;  %v706_v42 = vmul.f32 %v698_v49, %v1788_v12 }
  0xa8   :  { %vm1862_vm15 = vcmp.eq.f32.partialorder %v2264_v24, 8.507059e+37  ;;  %v702_v6 = vadd.f32 -2.4007583, %v694_v30  ;;  %v707_v40 = vmul.f32 %v699_v56, %v1798_v54  ;;  %v708_v47 = vmul.f32 %v700_v28, %v1808_v9 }
  0xa9   :  { %v695_v44 = vmul.f32 %v687_v35, %v1852_v37  ;;  %v709_v58 = vmul.f32 %v701_v55, %v1817_v63  ;;  %v712_v21 = vadd.f32 -2.5497324, %v704_v4  ;;  %v713_v26 = vadd.f32 -2.5497324, %v705_v62 }
  0xaa   :  { %v710_v29 = vmul.f32 %v702_v6, %v1831_v1  ;;  %v714_v51 = vadd.f32 -2.5497324, %v706_v42  ;;  %v715_v59 = vadd.f32 -2.5497324, %v707_v40  ;;  %v716_v5 = vadd.f32 -2.5497324, %v708_v47 }
  0xab   :  { %v703_v0 = vadd.f32 -2.4007583, %v695_v44  ;;  %v717_v36 = vadd.f32 -2.5497324, %v709_v58  ;;  %v720_v46 = vmul.f32 %v712_v21, %v1766_v57  ;;  %v721_v50 = vmul.f32 %v713_v26, %v1776_v3 }
  0xac   :  { %v718_v60 = vadd.f32 -2.5497324, %v710_v29  ;;  %v722_v30 = vmul.f32 %v714_v51, %v1788_v12  ;;  %v723_v49 = vmul.f32 %v715_v59, %v1798_v54  ;;  %v724_v56 = vmul.f32 %v716_v5, %v1808_v9 }
  0xad   :  { %v711_v28 = vmul.f32 %v703_v0, %v1852_v37  ;;  %v725_v25 = vmul.f32 %v717_v36, %v1817_v63  ;;  %v728_v24 = vadd.f32 4.3746643, %v720_v46  ;;  %v729_v35 = vadd.f32 4.3746643, %v721_v50 }
  0xae   :  { %v2269_v55 = vsel %vm1691_vm10, %v1516_v48, %v1673_v41  ;;  %v529_v62 = vsel %vm1878_vm0, %v1559_v11, %v525_v2  ;;  %v726_v6 = vmul.f32 %v718_v60, %v1831_v1  ;;  %v730_v42 = vadd.f32 4.3746643, %v722_v30 }
  0xaf   :  { %v519_v4 = vsel %vm1838_vm14, %v1714_v52, %v2269_v55  ;;  %v719_v40 = vadd.f32 -2.5497324, %v711_v28  ;;  %v731_v47 = vadd.f32 4.3746643, %v723_v49  ;;  %v736_v44 = vmul.f32 %v728_v24, %v1766_v57 }
  0xb0   :  { %v737_v43 = vmul.f32 %v729_v35, %v1776_v3  ;;  %v1905_v48 = vmul.f32 %v1685_v31, %v1400_v8  ;;  %v1909_v41 = vmul.f32 %v1699_v33, %v1407_v16  ;;  %v732_v52 = vadd.f32 4.3746643, %v724_v56 }
  0xb1   :  { %v738_v11 = vmul.f32 %v730_v42, %v1788_v12  ;;  %v1918_v2 = vmul.f32 %v1712_v61, %v1415_v27  ;;  %v727_v58 = vmul.f32 %v719_v40, %v1852_v37  ;;  %v733_v21 = vadd.f32 4.3746643, %v725_v25 }
  0xb2   :  { %v1922_v8 = vmul.f32 %v519_v4, %v1418_v19  ;;  %v1927_v16 = vsel %vm1862_vm15, %v1723_v34, %v529_v62  ;;  %v734_v31 = vadd.f32 4.3746643, %v726_v6  ;;  %v1929_v33 = vadd.f32 2.938164, %v736_v44 }
  0xb3   :  { %v735_v38 = vadd.f32 4.3746643, %v727_v58  ;;  %v739_v45 = vmul.f32 %v731_v47, %v1798_v54  ;;  %v1932_v26 = vadd.f32 2.938164, %v737_v43  ;;  %v752_v27 = vmul.f32 0.007784696, %v1766_v57 }
  0xb4   :  { %v740_v61 = vmul.f32 %v732_v52, %v1808_v9  ;;  %v1936_v29 = vadd.f32 2.938164, %v738_v11  ;;  %v753_v19 = vmul.f32 0.007784696, %v1776_v3  ;;  %v754_v53 = vmul.f32 0.007784696, %v1788_v12 }
  0xb5   :  { %v741_v34 = vmul.f32 %v733_v21, %v1817_v63  ;;  %v755_v51 = vmul.f32 0.007784696, %v1798_v54  ;;  %v756_v59 = vmul.f32 0.007784696, %v1808_v9  ;;  %v757_v5 = vmul.f32 0.007784696, %v1817_v63 }
  0xb6   :  { %v742_v20 = vmul.f32 %v734_v31, %v1831_v1  ;;  %v758_v0 = vmul.f32 0.007784696, %v1831_v1  ;;  %v759_v36 = vmul.f32 0.007784696, %v1852_v37  ;;  %v760_v46 = vadd.f32 0.32246712, %v752_v27 }
  0xb7   :  { %v743_v50 = vmul.f32 %v735_v38, %v1852_v37  ;;  %v1948_v60 = vadd.f32 2.938164, %v739_v45  ;;  %v761_v30 = vadd.f32 0.32246712, %v753_v19  ;;  %v762_v49 = vadd.f32 0.32246712, %v754_v53 }
  0xb8   :  { %v763_v56 = vadd.f32 0.32246712, %v755_v51  ;;  %v764_v28 = vadd.f32 0.32246712, %v756_v59  ;;  %v765_v25 = vadd.f32 0.32246712, %v757_v5  ;;  %v768_v24 = vmul.f32 %v760_v46, %v1766_v57 }
  0xb9   :  { %v766_v35 = vadd.f32 0.32246712, %v758_v0  ;;  %v767_v55 = vadd.f32 0.32246712, %v759_v36  ;;  %v769_v4 = vmul.f32 %v761_v30, %v1776_v3  ;;  %v770_v62 = vmul.f32 %v762_v49, %v1788_v12 }
  0xba   :  { %v771_v6 = vmul.f32 %v763_v56, %v1798_v54  ;;  %v772_v42 = vmul.f32 %v764_v28, %v1808_v9  ;;  %v773_v40 = vmul.f32 %v765_v25, %v1817_v63  ;;  %v776_v47 = vadd.f32 2.4451342, %v768_v24 }
  0xbb   :  { %v774_v44 = vmul.f32 %v766_v35, %v1831_v1  ;;  %v775_v43 = vmul.f32 %v767_v55, %v1852_v37  ;;  %v777_v52 = vadd.f32 2.4451342, %v769_v4  ;;  %v778_v11 = vadd.f32 2.4451342, %v770_v62 }
  0xbc   :  { %v779_v58 = vadd.f32 2.4451342, %v771_v6  ;;  %v780_v21 = vadd.f32 2.4451342, %v772_v42  ;;  %v781_v31 = vadd.f32 2.4451342, %v773_v40  ;;  %v784_v38 = vmul.f32 %v776_v47, %v1766_v57 }
  0xbd   :  { %v782_v45 = vadd.f32 2.4451342, %v774_v44  ;;  %v783_v27 = vadd.f32 2.4451342, %v775_v43  ;;  %v785_v19 = vmul.f32 %v777_v52, %v1776_v3  ;;  %v786_v53 = vmul.f32 %v778_v11, %v1788_v12 }
  0xbe   :  { %v787_v51 = vmul.f32 %v779_v58, %v1798_v54  ;;  %v788_v59 = vmul.f32 %v780_v21, %v1808_v9  ;;  %v789_v5 = vmul.f32 %v781_v31, %v1817_v63  ;;  %v792_v0 = vadd.f32 3.7544086, %v784_v38 }
  0xbf   :  { %v790_v36 = vmul.f32 %v782_v45, %v1831_v1  ;;  %v791_v46 = vmul.f32 %v783_v27, %v1852_v37  ;;  %v793_v30 = vadd.f32 3.7544086, %v785_v19  ;;  %v794_v49 = vadd.f32 3.7544086, %v786_v53 }
  0xc0   :  { %v795_v56 = vadd.f32 3.7544086, %v787_v51  ;;  %v796_v28 = vadd.f32 3.7544086, %v788_v59  ;;  %v797_v25 = vadd.f32 3.7544086, %v789_v5  ;;  %v800_v24 = vmul.f32 %v792_v0, %v1766_v57 }
  0xc1   :  { %v798_v35 = vadd.f32 3.7544086, %v790_v36  ;;  %v799_v55 = vadd.f32 3.7544086, %v791_v46  ;;  %v801_v4 = vmul.f32 %v793_v30, %v1776_v3  ;;  %v802_v62 = vmul.f32 %v794_v49, %v1788_v12 }
  0xc2   :  { %v803_v6 = vmul.f32 %v795_v56, %v1798_v54  ;;  %v804_v42 = vmul.f32 %v796_v28, %v1808_v9  ;;  %v805_v40 = vmul.f32 %v797_v25, %v1817_v63  ;;  %v808_v47 = vadd.f32 1.0, %v800_v24 }
  0xc3   :  { %v1972_v44 = vadd.f32 2.938164, %v740_v61  ;;  %v806_v43 = vmul.f32 %v798_v35, %v1831_v1  ;;  %v1975_v52 = vadd.f32 1.0, %v801_v4  ;;  %v1977_v57 = vadd.f32 1.0, %v802_v62 }
  0xc4   :  { %v1979_v11 = vadd.f32 2.938164, %v741_v34  ;;  %v1981_v3 = vadd.f32 2.938164, %v742_v20  ;;  %v807_v12 = vmul.f32 %v799_v55, %v1852_v37  ;;  %1127 = vrcp.f32 %v808_v47 }
  0xc5   :  { %v1986_v54 = vmul.f32 %v1927_v16, %v1421_v39  ;;  %v1988_v9 = vadd.f32 2.938164, %v743_v50  ;;  %v1990_v63 = vadd.f32 1.0, %v803_v6  ;;  %v825_v1 = vand.u32 2147483647, %v808_v47 }
  0xc6   :  { %v1992_v61 = vadd.f32 1.0, %v804_v42  ;;  %v1994_v58 = vadd.f32 1.0, %v805_v40  ;;  %v827_v34 = vand.u32 2147483648, %v808_v47  ;;  %1129 = vrcp.f32 %v1975_v52 }
  0xc7   :  { %v1997_v20 = vadd.f32 1.0, %v806_v43  ;;  %v840_v37 = vand.u32 2147483647, %v1975_v52  ;;  %v842_v21 = vand.u32 2147483648, %v1975_v52  ;;  %1131 = vrcp.f32 %v1977_v57 }
  0xc8   :  { %v2002_v39 = vadd.f32 1.0, %v807_v12  ;;  %vm821_vm10 = vweird.f32 %v808_v47  ;;  %vm836_vm1 = vweird.f32 %v1975_v52  ;;  %v857_v16 = vand.u32 2147483648, %v1977_v57 }
  0xc9   :  { %vm2006_vm2 = vcmp.eq.f32.partialorder %v825_v1, 8.507059e+37  ;;  %vm851_vm3 = vweird.f32 %v1977_v57  ;;  %v855_v31 = vand.u32 2147483647, %v1977_v57  ;;  %1133 = vrcp.f32 %v1990_v63 }
  0xca   :  { %v1128_v38 = vpop.eup %1127  ;;  %v828_v45 = vor.u32 1.1754944e-38, %v827_v34  ;;  %v870_v27 = vand.u32 2147483647, %v1990_v63  ;;  %v872_v19 = vand.u32 2147483648, %v1990_v63  ;;  %1135 = vrcp.f32 %v1992_v61 }
  0xcb   :  { %v817_v53 = vmul.f32 %v1128_v38, %v808_v47  ;;  %vm2016_vm4 = vcmp.eq.f32.partialorder %v840_v37, 8.507059e+37  ;;  %v843_v59 = vor.u32 1.1754944e-38, %v842_v21  ;;  %v2020_v5 = vor.u32 1.1754944e-38, %v857_v16 }
  0xcc   :  { %vm866_vm5 = vweird.f32 %v1990_v63  ;;  %v1130_v0 = vpop.eup %1129  ;;  %vm822_vm6 = vweird.f32 %v1128_v38  ;;  %v885_v36 = vand.u32 2147483647, %v1992_v61  ;;  %v887_v46 = vand.u32 2147483648, %v1992_v61 }
  0xcd   :  { %1137 = vrcp.f32 %v1994_v58  ;;  %v1132_v30 = vpop.eup %1131  ;;  %v818_v49 = vsub.f32 1.0, %v817_v53  ;;  %v832_v56 = vmul.f32 %v1130_v0, %v1975_v52  ;;  %vm2027_vm7 = vcmp.eq.f32.partialorder %v855_v31, 8.507059e+37  ;;  %vm2044_vm15 = vmor %vm821_vm10, %vm822_vm6 }
  0xce   :  { %v873_v25 = vor.u32 1.1754944e-38, %v872_v19  ;;  %vm881_vm8 = vweird.f32 %v1992_v61  ;;  %vm837_vm9 = vweird.f32 %v1130_v0  ;;  %v847_v24 = vmul.f32 %v1132_v30, %v1977_v57 }
  0xcf   :  { %vm852_vm11 = vweird.f32 %v1132_v30  ;;  %vm2033_vm12 = vcmp.eq.f32.partialorder %v870_v27, 8.507059e+37  ;;  %v1134_v55 = vpop.eup %1133  ;;  %v819_v4 = vmul.f32 %v1128_v38, %v818_v49  ;;  %v833_v62 = vsub.f32 1.0, %v832_v56  ;;  %vm2056_vm0 = vmor %vm836_vm1, %vm837_vm9 }
  0xd0   :  { %vm2038_vm14 = vcmp.eq.f32.partialorder %v885_v36, 8.507059e+37  ;;  %v888_v42 = vor.u32 1.1754944e-38, %v887_v46  ;;  %v1136_v40 = vpop.eup %1135  ;;  %v848_v12 = vsub.f32 1.0, %v847_v24  ;;  %v862_v1 = vmul.f32 %v1134_v55, %v1990_v63  ;;  %vm2065_vm13 = vmor %vm851_vm3, %vm852_vm11 }
  0xd1   :  { %v900_v34 = vand.u32 2147483647, %v1994_v58  ;;  %1139 = vrcp.f32 %v1997_v20  ;;  %v820_v37 = vadd.f32 %v1128_v38, %v819_v4  ;;  %v834_v21 = vmul.f32 %v1130_v0, %v833_v62 }
  0xd2   :  { %v877_v16 = vmul.f32 %v1136_v40, %v1992_v61  ;;  %v902_v31 = vand.u32 2147483648, %v1994_v58  ;;  %v849_v19 = vmul.f32 %v1132_v30, %v848_v12  ;;  %v863_v53 = vsub.f32 1.0, %v862_v1 }
  0xd3   :  { %v1138_v27 = vpop.eup %1137  ;;  %vm867_vm10 = vweird.f32 %v1134_v55  ;;  %vm882_vm6 = vweird.f32 %v1136_v40  ;;  %v824_v36 = vsel %vm2044_vm15, %v1128_v38, %v820_v37  ;;  %v835_v46 = vadd.f32 %v1130_v0, %v834_v21 }
  0xd4   :  { %v878_v52 = vsub.f32 1.0, %v877_v16  ;;  %v892_v56 = vmul.f32 %v1138_v27, %v1994_v58  ;;  %v829_v24 = vsel %vm2006_vm2, %v828_v45, %v824_v36  ;;  %v850_v4 = vadd.f32 %v1132_v30, %v849_v19  ;;  %vm2080_vm3 = vmor %vm866_vm5, %vm867_vm10 }
  0xd5   :  { %v864_v62 = vmul.f32 %v1134_v55, %v863_v53  ;;  %vm2072_vm1 = vcmp.eq.f32.partialorder %v900_v34, 8.507059e+37  ;;  %v839_v38 = vsel %vm2056_vm0, %v1130_v0, %v835_v46  ;;  %vm897_vm9 = vweird.f32 %v1138_v27  ;;  %vm2091_vm2 = vmor %vm881_vm8, %vm882_vm6 }
  0xd6   :  { %v879_v43 = vmul.f32 %v1136_v40, %v878_v52  ;;  %v893_v1 = vsub.f32 1.0, %v892_v56  ;;  %v844_v45 = vsel %vm2016_vm4, %v843_v59, %v839_v38  ;;  %v854_v34 = vsel %vm2065_vm13, %v1132_v30, %v850_v4  ;;  %v981_v56 = vld [vmem:[#allocation4 + $0x28] sm:$0xff] }
  0xd7   :  { %v1140_v50 = vpop.eup %1139  ;;  %v865_v37 = vadd.f32 %v1134_v55, %v864_v62  ;;  %v903_v0 = vor.u32 1.1754944e-38, %v902_v31  ;;  %v830_v21 = vmul.f32 %v829_v24, %v1929_v33  ;;  %vm911_vm5 = vweird.f32 %v1997_v20 }
  0xd8   :  { %v880_v16 = vadd.f32 %v1136_v40, %v879_v43  ;;  %v894_v47 = vmul.f32 %v1138_v27, %v893_v1  ;;  %v845_v51 = vmul.f32 %v844_v45, %v1932_v26  ;;  %v859_v59 = vsel %vm2027_vm7, %v2020_v5, %v854_v34 }
  0xd9   :  { %v869_v61 = vsel %vm2080_vm3, %v1134_v55, %v865_v37  ;;  %vm2292_vm4 = vweird.f32 %v1994_v58  ;;  %v907_v33 = vmul.f32 %v1140_v50, %v1997_v20  ;;  %v915_v5 = vand.u32 2147483647, %v1997_v20 }
  0xda   :  { %vm2105_vm8 = vmor %vm2292_vm4, %vm897_vm9  ;;  %v874_v31 = vsel %vm2033_vm12, %v873_v25, %v869_v61  ;;  %v884_v26 = vsel %vm2091_vm2, %v1136_v40, %v880_v16  ;;  %v895_v19 = vadd.f32 %v1138_v27, %v894_v47  ;;  %vm912_vm7 = vweird.f32 %v1140_v50  ;;  %v2310_v61 = vld [vmem:[#allocation17_spill] sm:$0xff] }
  0xdb   :  { %v889_v28 = vsel %vm2038_vm14, %v888_v42, %v884_v26  ;;  %v908_v55 = vsub.f32 1.0, %v907_v33  ;;  %v917_v58 = vand.u32 2147483648, %v1997_v20  ;;  %v860_v53 = vmul.f32 %v859_v59, %v1936_v29  ;;  %vm2132_vm12 = vmor %vm911_vm5, %vm912_vm7  ;;  %v2309_v59 = vld [vmem:[#allocation16_spill] sm:$0xff]  ;;  %v2311_v33 = vld [vmem:[#allocation18_spill] sm:$0xff] }
  0xdc   :  { %v875_v36 = vmul.f32 %v874_v31, %v1948_v60  ;;  %v899_v25 = vsel %vm2105_vm8, %v1138_v27, %v895_v19  ;;  %1141 = vrcp.f32 %v2002_v39  ;;  %v890_v35 = vmul.f32 %v889_v28, %v1972_v44  ;;  %v979_v29 = vld [vmem:[#allocation4 + $0x18] sm:$0xff] }
  0xdd   :  { %v904_v40 = vsel %vm2072_vm1, %v903_v0, %v899_v25  ;;  %v909_v6 = vmul.f32 %v1140_v50, %v908_v55  ;;  %vm2126_vm11 = vcmp.eq.f32.partialorder %v915_v5, 8.507059e+37  ;;  %v918_v60 = vor.u32 1.1754944e-38, %v917_v58 }
  0xde   :  { %vm926_vm13 = vweird.f32 %v2002_v39  ;;  %v930_v27 = vand.u32 2147483647, %v2002_v39  ;;  %v932_v44 = vand.u32 2147483648, %v2002_v39  ;;  %v905_v46 = vmul.f32 %v904_v40, %v1979_v11  ;;  %v976_v40 = vld [vmem:[#allocation4] sm:$0xff] }
  0xdf   :  { %v910_v49 = vadd.f32 %v1140_v50, %v909_v6  ;;  %vm936_vm14 = vcmp.gt.f32.partialorder %v1223_v7, 0.5  ;;  %vm937_vm15 = vcmp.gt.f32.partialorder %v1225_v10, 0.5  ;;  %vm938_vm0 = vcmp.gt.f32.partialorder %v1230_v14, 0.5  ;;  %v2301_v10 = vld [vmem:[#allocation10_spill] sm:$0xff]  ;;  %v978_v6 = vld [vmem:[#allocation4 + $0x10] sm:$0xff] }
  0xe0   :  { %v933_v52 = vor.u32 1.1754944e-38, %v932_v44  ;;  %vm939_vm10 = vcmp.gt.f32.partialorder %v1232_v15, 0.5  ;;  %vm940_vm6 = vcmp.gt.f32.partialorder %v1237_v17, 0.5  ;;  %vm2147_vm1 = vcmp.eq.f32.partialorder %v930_v27, 8.507059e+37  ;;  %v2303_v15 = vld [vmem:[#allocation12_spill] sm:$0xff]  ;;  %v980_v44 = vld [vmem:[#allocation4 + $0x20] sm:$0xff] }
  0xe1   :  { %v914_v20 = vsel %vm2132_vm12, %v1140_v50, %v910_v49  ;;  %vm941_vm3 = vcmp.gt.f32.partialorder %v1239_v18, 0.5  ;;  %vm942_vm9 = vcmp.gt.f32.partialorder %v1251_v22, 0.5  ;;  %v944_v11 = vsub.f32 0.0, %v830_v21  ;;  %v2307_v18 = vld [vmem:[#allocation14_spill] sm:$0xff] }
  0xe2   :  { %v1142_v24 = vpop.eup %1141  ;;  %v919_v4 = vsel %vm2126_vm11, %v918_v60, %v914_v20  ;;  %v945_v62 = vsub.f32 0.0, %v845_v51  ;;  %v946_v12 = vsub.f32 0.0, %v860_v53  ;;  %v947_v38 = vsub.f32 0.0, %v875_v36 }
  0xe3   :  { %v920_v57 = vmul.f32 %v919_v4, %v1981_v3  ;;  %v922_v43 = vmul.f32 %v1142_v24, %v2002_v39  ;;  %vm927_vm2 = vweird.f32 %v1142_v24  ;;  %v948_v1 = vsub.f32 0.0, %v890_v35 }
  0xe4   :  { %v949_v50 = vsub.f32 0.0, %v905_v46  ;;  %v952_v45 = vsel %vm936_vm14, %v944_v11, %v830_v21  ;;  %v953_v34 = vsel %vm937_vm15, %v945_v62, %v845_v51  ;;  %v954_v37 = vsel %vm938_vm0, %v946_v12, %v860_v53  ;;  %v2302_v21 = vld [vmem:[#allocation11_spill] sm:$0xff]  ;;  %v2304_v51 = vld [vmem:[#allocation13_spill] sm:$0xff]  ;;  %vm2180_vm14 = vmor %vm926_vm13, %vm927_vm2 }
  0xe5   :  { %v923_v63 = vsub.f32 1.0, %v922_v43  ;;  %v950_v0 = vsub.f32 0.0, %v920_v57  ;;  %v955_v16 = vsel %vm939_vm10, %v947_v38, %v875_v36  ;;  %v956_v3 = vsel %vm940_vm6, %v948_v1, %v890_v35  ;;  %v982_v12 = vld [vmem:[#allocation4 + $0x30] sm:$0xff] }
  0xe6   :  { %vm943_vm5 = vcmp.gt.f32.partialorder %v1253_v23, 0.5  ;;  %v957_v7 = vsel %vm941_vm3, %v949_v50, %v905_v46  ;;  %vm960_vm4 = vcmp.lt.f32.partialorder %v1498_v13, 0.02425  ;;  %vm961_vm8 = vcmp.lt.f32.partialorder %v2301_v10, 0.02425  ;;  %v2308_v13 = vld [vmem:[#allocation15_spill] sm:$0xff] }
  0xe7   :  { %vm962_vm7 = vcmp.lt.f32.partialorder %v2302_v21, 0.02425  ;;  %v924_v14 = vmul.f32 %v1142_v24, %v923_v63  ;;  %v958_v47 = vsel %vm942_vm9, %v950_v0, %v920_v57  ;;  %vm963_vm11 = vcmp.lt.f32.partialorder %v2303_v15, 0.02425 }
  0xe8   :  { %vm964_vm12 = vcmp.lt.f32.partialorder %v2304_v51, 0.02425  ;;  %vm965_vm15 = vcmp.lt.f32.partialorder %v2307_v18, 0.02425  ;;  %vm966_vm0 = vcmp.lt.f32.partialorder %v2308_v13, 0.02425  ;;  %v968_v22 = vsel %vm960_vm4, %v952_v45, %v2310_v61 }
  0xe9   :  { %vm967_vm10 = vcmp.lt.f32.partialorder %v2309_v59, 0.02425  ;;  %v925_v30 = vadd.f32 %v1142_v24, %v924_v14  ;;  %v969_v31 = vsel %vm961_vm8, %v953_v34, %v2311_v33  ;;  %v970_v26 = vsel %vm962_vm7, %v954_v37, %v1905_v48  ;;  %v977_v48 = vld [vmem:[#allocation4 + $0x8] sm:$0xff]  ;;  %v983_v34 = vld [vmem:[#allocation4 + $0x38] sm:$0xff] }
  0xea   :  { %v971_v19 = vsel %vm963_vm11, %v955_v16, %v1909_v41  ;;  %v972_v39 = vsel %vm964_vm12, %v956_v3, %v1914_v32  ;;  %v973_v5 = vsel %vm965_vm15, %v957_v7, %v1918_v2  ;;  %v974_v28 = vsel %vm966_vm0, %v958_v47, %v1922_v8 }
  0xeb   :  { %v984_v55 = vadd.f32 0.5, %v968_v22  ;;  %v929_v58 = vsel %vm2180_vm14, %v1142_v24, %v925_v30  ;;  %v985_v53 = vadd.f32 0.5, %v969_v31  ;;  %v986_v36 = vadd.f32 0.5, %v970_v26 }
  0xec   :  { %v987_v25 = vadd.f32 0.5, %v971_v19  ;;  %v934_v35 = vsel %vm2147_vm1, %v933_v52, %v929_v58  ;;  %v988_v41 = vadd.f32 0.5, %v972_v39  ;;  %v989_v42 = vadd.f32 0.5, %v973_v5 }
  0xed   :  { %v990_v32 = vadd.f32 0.5, %v974_v28  ;;  %v935_v2 = vmul.f32 %v934_v35, %v1988_v9  ;;  %v992_v8 = vmul.f32 0.25, %v984_v55  ;;  %v993_v60 = vmul.f32 0.25, %v985_v53 }
  0xee   :  { %v994_v27 = vmul.f32 0.25, %v986_v36  ;;  %v995_v46 = vmul.f32 0.25, %v987_v25  ;;  %v996_v49 = vmul.f32 0.25, %v988_v41  ;;  %v997_v20 = vmul.f32 0.25, %v989_v42 }
  0xef   :  { %v998_v11 = vmul.f32 0.25, %v990_v32  ;;  %v951_v24 = vsub.f32 0.0, %v935_v2  ;;  %v1000_v52 = vadd.f32 %v992_v8, %v976_v40  ;;  %v1001_v4 = vadd.f32 %v993_v60, %v977_v48 }
  0xf0   :  { %v1002_v62 = vadd.f32 %v994_v27, %v978_v6  ;;  %v1003_v38 = vadd.f32 %v995_v46, %v979_v29  ;;  %v1004_v9 = vadd.f32 %v996_v49, %v980_v44  ;;  %v1005_v1 = vadd.f32 %v997_v20, %v981_v56 }
  0xf1   :  { %v959_v57 = vsel %vm943_vm5, %v951_v24, %v935_v2  ;;  %1008 = vst [vmem:[#allocation7] sm:$0xff] %v1000_v52  ;;  %v1006_v45 = vadd.f32 %v998_v11, %v982_v12 }
  0xf2   :  { %v975_v43 = vsel %vm967_vm10, %v959_v57, %v1986_v54  ;;  %1009 = vst [vmem:[#allocation7 + $0x8] sm:$0xff] %v1001_v4 }
  0xf3   :  { %v991_v50 = vadd.f32 0.5, %v975_v43  ;;  %1010 = vst [vmem:[#allocation7 + $0x10] sm:$0xff] %v1002_v62 }
  0xf4   :  { %1011 = vst [vmem:[#allocation7 + $0x18] sm:$0xff] %v1003_v38 }
  0xf5   :  { %v999_v37 = vmul.f32 0.25, %v991_v50  ;;  %1012 = vst [vmem:[#allocation7 + $0x20] sm:$0xff] %v1004_v9 }
  0xf6   :  { %1013 = vst [vmem:[#allocation7 + $0x28] sm:$0xff] %v1005_v1 }
  0xf7   :  { %v1007_v63 = vadd.f32 %v999_v37, %v983_v34  ;;  %1014 = vst [vmem:[#allocation7 + $0x30] sm:$0xff] %v1006_v45 }
  0xf9   :  { %1015 = vst [vmem:[#allocation7 + $0x38] sm:$0xff] %v1007_v63 }
  0xfa   :  { %1019 = vsyncadd [#allocation6], 768  ;;  %s1022_s30 = sshll.u32 %s2212_s2, 4  ;;  %s1198_s3 = smov [#allocation7]   ;;  %s1023_s30 = int_to_ptr.hbm [resolvable:$true] %s1022_s30 }
  0xfb   :  { %s1020_s4 = sshll.u32 %s1198_s3, 4  ;;  %s1021_s4 = int_to_ptr.vmem [resolvable:$true] %s1020_s4 }
  0xfc   :  { %1028 = dma.vmem_to_hbm [thread:$0]  %s1021_s4, 256, %s1023_s30, [#allocation6], %s1196_s14, %s1196_s14, %s1197_s15  }
  0xfd   :  { %1193 = dma.done.wait [#allocation6], 1024  }
  0xfe   :  { %1194 = vsyncadd [#allocation6], 4294966272 }
  0xff   :  { %1033 = vsyncpa [#allocation5], 1 }
 0x100   :  { %1034 = vsyncpa [#allocation6], 1 }

</bundles_post_ra>
